<compile_context>
chip_gen: v7x
topology: tpu7x:2x2x1
jax: 0.10.0
libtpu: 0.0.40
codegen_flags: <defaults>
</compile_context>

<pallas_src>
import functools

import jax
import jax.numpy as jnp
from jax.experimental import pallas as pl
from jax.experimental.pallas import tpu as pltpu


def _round_up(x, m):
    return ((x + m - 1) // m) * m


def actor_kernel(s_ref, w1_ref, b1_ref, w2_ref, b2_ref, w3_ref, b3_ref, out_ref):
    # layer 1: Linear(state_dim, 800) + ReLU  (bf16 MXU inputs, fp32 accumulation,
    # fp32 bias/ReLU, then immediate bf16 downcast so only the narrow copy is live).
    h1 = jnp.dot(s_ref[...], w1_ref[...], preferred_element_type=jnp.float32)
    h1 = jnp.maximum(h1 + b1_ref[...], 0.0).astype(jnp.bfloat16)
    # layer 2: Linear(800, 600) + ReLU
    h2 = jnp.dot(h1, w2_ref[...], preferred_element_type=jnp.float32)
    h2 = jnp.maximum(h2 + b2_ref[...], 0.0).astype(jnp.bfloat16)
    # layer 3: Linear(600, action_dim) + Tanh (tanh in fp32, stored bf16, 128-lane wide)
    a = jnp.dot(h2, w3_ref[...], preferred_element_type=jnp.float32)
    out_ref[...] = jnp.tanh(a + b3_ref[...]).astype(out_ref.dtype)


def init_actor_params(key, state_dim, action_dim):
    """Deterministic init mirroring nn.Linear default (U[-1/sqrt(fan_in), 1/sqrt(fan_in)]).
    Weights stored as [in, out] (transposed from PyTorch's [out, in])."""
    dims = [(state_dim, 800), (800, 600), (600, action_dim)]
    params = {}
    keys = jax.random.split(key, 2 * len(dims))
    for i, (din, dout) in enumerate(dims):
        bound = 1.0 / (din ** 0.5)
        w = jax.random.uniform(keys[2 * i], (din, dout), jnp.float32, -bound, bound)
        b = jax.random.uniform(keys[2 * i + 1], (1, dout), jnp.float32, -bound, bound)
        params[f"w{i + 1}"] = w
        params[f"b{i + 1}"] = b
    return params


def pad_and_cast_params(params, weight_dtype=jnp.bfloat16):
    """Zero-pad weights/biases to lane-aligned shapes (multiples of 128) and cast
    weights to bf16. Biases stay fp32 so the adds / activations run in fp32."""
    def pad2(x, shape, dt):
        buf = jnp.zeros(shape, dt)
        return buf.at[: x.shape[0], : x.shape[1]].set(x.astype(dt))

    sd, h1 = params["w1"].shape
    _, h2 = params["w2"].shape
    _, ad = params["w3"].shape
    sdp = _round_up(max(sd, 1), 128)   # 24  -> 128
    h1p = _round_up(h1, 128)           # 800 -> 896
    h2p = _round_up(h2, 128)           # 600 -> 640
    adp = _round_up(max(ad, 1), 128)   # 2   -> 128

    return {
        "w1": pad2(params["w1"], (sdp, h1p), weight_dtype),
        "b1": pad2(params["b1"], (1, h1p), jnp.float32),
        "w2": pad2(params["w2"], (h1p, h2p), weight_dtype),
        "b2": pad2(params["b2"], (1, h2p), jnp.float32),
        "w3": pad2(params["w3"], (h2p, adp), weight_dtype),
        "b3": pad2(params["b3"], (1, adp), jnp.float32),
    }


def _actor_forward(s, kparams, *, action_dim, batch_tile=512):
    """s: [B, state_dim] float32. kparams: padded/bf16 params from pad_and_cast_params.
    Note: tb/b_pad derive from B at trace time, so each distinct batch size compiles once."""
    w1, b1 = kparams["w1"], kparams["b1"]
    w2, b2 = kparams["w2"], kparams["b2"]
    w3, b3 = kparams["w3"], kparams["b3"]

    B, state_dim = s.shape
    sdp = w1.shape[0]
    adp = w3.shape[1]

    # Balanced, sublane-aligned batch tile: never pushes a mostly-padding tail tile
    # through the matmuls; >= 2 grid steps whenever B > batch_tile (v7x two-TC split).
    n_target = pl.cdiv(B, batch_tile)
    tb = min(batch_tile, _round_up(pl.cdiv(B, n_target), 8))
    b_pad = _round_up(B, tb)

    # Pad batch to the tile and state_dim to the lane width; cast to bf16 for the MXU.
    # Zero padding contributes nothing to any dot product.  (Fused into this jit.)
    s_p = jnp.zeros((b_pad, sdp), jnp.bfloat16)
    s_p = s_p.at[:B, :state_dim].set(s.astype(jnp.bfloat16))

    out = pl.pallas_call(
        actor_kernel,
        out_shape=jax.ShapeDtypeStruct((b_pad, adp), jnp.bfloat16),
        grid_spec=pltpu.PrefetchScalarGridSpec(
            num_scalar_prefetch=0,
            grid=(b_pad // tb,),
            in_specs=[
                pl.BlockSpec((tb, sdp), lambda i: (i, 0)),   # activations: tiled over batch
                pl.BlockSpec(w1.shape, lambda i: (0, 0)),    # weights/biases: resident across grid
                pl.BlockSpec(b1.shape, lambda i: (0, 0)),
                pl.BlockSpec(w2.shape, lambda i: (0, 0)),
                pl.BlockSpec(b2.shape, lambda i: (0, 0)),
                pl.BlockSpec(w3.shape, lambda i: (0, 0)),
                pl.BlockSpec(b3.shape, lambda i: (0, 0)),
            ],
            out_specs=pl.BlockSpec((tb, adp), lambda i: (i, 0)),
        ),
        compiler_params=pltpu.CompilerParams(
            dimension_semantics=("parallel",),      # batch tiles shard across v7x's 2 TCs
            vmem_limit_bytes=32 * 1024 * 1024,      # explicit budget; ~7 MiB used at tb=512
        ),
    )(s_p, w1, b1, w2, b2, w3, b3)
    return out[:B, :action_dim].astype(jnp.float32)


actor_forward = jax.jit(_actor_forward, static_argnames=("action_dim", "batch_tile"))


def actor_reference_fp32(s, params):
    h1 = jnp.maximum(s @ params["w1"] + params["b1"], 0.0)
    h2 = jnp.maximum(h1 @ params["w2"] + params["b2"], 0.0)
    return jnp.tanh(h2 @ params["w3"] + params["b3"])


def actor_reference_bf16(s, params):
    """Mirrors the kernel's quantization: bf16 matmul inputs, fp32 accumulation,
    fp32 bias/ReLU/tanh, bf16 output store."""
    bf = lambda x: x.astype(jnp.bfloat16)
    h1 = jnp.maximum(
        jnp.dot(bf(s), bf(params["w1"]), preferred_element_type=jnp.float32) + params["b1"], 0.0)
    h2 = jnp.maximum(
        jnp.dot(bf(h1), bf(params["w2"]), preferred_element_type=jnp.float32) + params["b2"], 0.0)
    a = jnp.tanh(
        jnp.dot(bf(h2), bf(params["w3"]), preferred_element_type=jnp.float32) + params["b3"])
    return a.astype(jnp.bfloat16).astype(jnp.float32)


if __name__ == "__main__":
    key = jax.random.PRNGKey(0)
    k_param, k_state = jax.random.split(key)

    # Small, TD3-robot-nav-like shapes: 24-dim state (laser + goal + prev action), 2-dim action.
    batch, state_dim, action_dim = 2, 24, 2

    params = init_actor_params(k_param, state_dim, action_dim)
    kparams = pad_and_cast_params(params)
    s = jax.random.normal(k_state, (batch, state_dim), jnp.float32)

    out = jax.block_until_ready(actor_forward(s, kparams, action_dim=action_dim))

    ref_q = actor_reference_bf16(s, params)   # quantization-matched path
    ref_f = actor_reference_fp32(s, params)   # original fp32 semantics
    assert out.shape == (batch, action_dim)
    assert jnp.allclose(out, ref_q, atol=1e-2, rtol=1e-2), float(jnp.max(jnp.abs(out - ref_q)))
    assert jnp.allclose(out, ref_f, atol=5e-2, rtol=5e-2), float(jnp.max(jnp.abs(out - ref_f)))

    print("KERNEL_OK")
</pallas_src>

<mosaic_0001>
module attributes {stable_mosaic.version = 11 : i64} {
  func.func @actor_kernel(%arg0: i32, %arg1: memref<8x128xbf16, #tpu.memory_space<vmem>>, %arg2: memref<128x896xbf16, #tpu.memory_space<vmem>>, %arg3: memref<1x896xf32, #tpu.memory_space<vmem>>, %arg4: memref<896x640xbf16, #tpu.memory_space<vmem>>, %arg5: memref<1x640xf32, #tpu.memory_space<vmem>>, %arg6: memref<640x128xbf16, #tpu.memory_space<vmem>>, %arg7: memref<1x128xf32, #tpu.memory_space<vmem>>, %arg8: memref<8x128xbf16, #tpu.memory_space<vmem>>) attributes {dimension_semantics = [#tpu.dimension_semantics<parallel>], iteration_bounds = array<i64: 1>, scalar_prefetch = 0 : i64, scratch_operands = 0 : i64, tpu.core_type = #tpu.core_type<tc>, window_params = [{transform_indices = @transform_0, window_bounds = array<i64: 8, 128>}, {pipeline_mode = #tpu.pipeline_mode<synchronous>, transform_indices = @transform_1, window_bounds = array<i64: 128, 896>}, {pipeline_mode = #tpu.pipeline_mode<synchronous>, transform_indices = @transform_2, window_bounds = array<i64: 1, 896>}, {pipeline_mode = #tpu.pipeline_mode<synchronous>, transform_indices = @transform_3, window_bounds = array<i64: 896, 640>}, {pipeline_mode = #tpu.pipeline_mode<synchronous>, transform_indices = @transform_4, window_bounds = array<i64: 1, 640>}, {pipeline_mode = #tpu.pipeline_mode<synchronous>, transform_indices = @transform_5, window_bounds = array<i64: 640, 128>}, {pipeline_mode = #tpu.pipeline_mode<synchronous>, transform_indices = @transform_6, window_bounds = array<i64: 1, 128>}, {transform_indices = @transform_7, window_bounds = array<i64: 8, 128>}]} {
    %c0 = arith.constant 0 : index
    %c0_0 = arith.constant 0 : index
    %0 = vector.load %arg1[%c0, %c0_0] : memref<8x128xbf16, #tpu.memory_space<vmem>>, vector<8x128xbf16>
    %c0_1 = arith.constant 0 : index
    %c0_2 = arith.constant 0 : index
    %1 = vector.load %arg2[%c0_1, %c0_2] : memref<128x896xbf16, #tpu.memory_space<vmem>>, vector<128x896xbf16>
    %cst = arith.constant dense<0.000000e+00> : vector<8x896xf32>
    %2 = tpu.matmul %0, %1, %cst {dimension_numbers = #tpu.dot_dimension_numbers<[1], [0], [0], [1], [0, 0, 1, 1], [], []>} : vector<8x128xbf16>, vector<128x896xbf16>, vector<8x896xf32> -> vector<8x896xf32>
    %c0_3 = arith.constant 0 : index
    %c0_4 = arith.constant 0 : index
    %3 = vector.load %arg3[%c0_3, %c0_4] : memref<1x896xf32, #tpu.memory_space<vmem>>, vector<1x896xf32>
    %4 = vector.broadcast %3 : vector<1x896xf32> to vector<8x896xf32>
    %5 = arith.addf %2, %4 : vector<8x896xf32>
    %cst_5 = arith.constant 0.000000e+00 : f32
    %6 = vector.broadcast %cst_5 : f32 to vector<8x896xf32>
    %7 = arith.maximumf %5, %6 : vector<8x896xf32>
    %8 = arith.truncf %7 : vector<8x896xf32> to vector<8x896xbf16>
    %c0_6 = arith.constant 0 : index
    %c0_7 = arith.constant 0 : index
    %9 = vector.load %arg4[%c0_6, %c0_7] : memref<896x640xbf16, #tpu.memory_space<vmem>>, vector<896x640xbf16>
    %cst_8 = arith.constant dense<0.000000e+00> : vector<8x640xf32>
    %10 = tpu.matmul %8, %9, %cst_8 {dimension_numbers = #tpu.dot_dimension_numbers<[1], [0], [0], [1], [0, 0, 1, 1], [], []>} : vector<8x896xbf16>, vector<896x640xbf16>, vector<8x640xf32> -> vector<8x640xf32>
    %c0_9 = arith.constant 0 : index
    %c0_10 = arith.constant 0 : index
    %11 = vector.load %arg5[%c0_9, %c0_10] : memref<1x640xf32, #tpu.memory_space<vmem>>, vector<1x640xf32>
    %12 = vector.broadcast %11 : vector<1x640xf32> to vector<8x640xf32>
    %13 = arith.addf %10, %12 : vector<8x640xf32>
    %cst_11 = arith.constant 0.000000e+00 : f32
    %14 = vector.broadcast %cst_11 : f32 to vector<8x640xf32>
    %15 = arith.maximumf %13, %14 : vector<8x640xf32>
    %16 = arith.truncf %15 : vector<8x640xf32> to vector<8x640xbf16>
    %c0_12 = arith.constant 0 : index
    %c0_13 = arith.constant 0 : index
    %17 = vector.load %arg6[%c0_12, %c0_13] : memref<640x128xbf16, #tpu.memory_space<vmem>>, vector<640x128xbf16>
    %cst_14 = arith.constant dense<0.000000e+00> : vector<8x128xf32>
    %18 = tpu.matmul %16, %17, %cst_14 {dimension_numbers = #tpu.dot_dimension_numbers<[1], [0], [0], [1], [0, 0, 1, 1], [], []>} : vector<8x640xbf16>, vector<640x128xbf16>, vector<8x128xf32> -> vector<8x128xf32>
    %c0_15 = arith.constant 0 : index
    %c0_16 = arith.constant 0 : index
    %19 = vector.load %arg7[%c0_15, %c0_16] : memref<1x128xf32, #tpu.memory_space<vmem>>, vector<1x128xf32>
    %20 = vector.broadcast %19 : vector<1x128xf32> to vector<8x128xf32>
    %21 = arith.addf %18, %20 : vector<8x128xf32>
    %22 = math.tanh %21 : vector<8x128xf32>
    %23 = arith.truncf %22 : vector<8x128xf32> to vector<8x128xbf16>
    %c0_17 = arith.constant 0 : index
    %c0_18 = arith.constant 0 : index
    %24 = vector.load %arg8[%c0_17, %c0_18] : memref<8x128xbf16, #tpu.memory_space<vmem>>, vector<8x128xbf16>
    tpu.vector_store %arg8[%c0_17, %c0_18], %23 {strides = array<i32>} : memref<8x128xbf16, #tpu.memory_space<vmem>>, vector<8x128xbf16>,
    return
  }
  func.func @transform_0(%arg0: i32) -> (i32, i32) {
    %c0_i32 = arith.constant 0 : i32
    %c0_i32_0 = arith.constant 0 : i32
    return %arg0, %c0_i32 : i32, i32
  }
  func.func @transform_1(%arg0: i32) -> (i32, i32) {
    %c0_i32 = arith.constant 0 : i32
    %c0_i32_0 = arith.constant 0 : i32
    %c0_i32_1 = arith.constant 0 : i32
    return %c0_i32, %c0_i32_0 : i32, i32
  }
  func.func @transform_2(%arg0: i32) -> (i32, i32) {
    %c0_i32 = arith.constant 0 : i32
    %c0_i32_0 = arith.constant 0 : i32
    %c0_i32_1 = arith.constant 0 : i32
    return %c0_i32, %c0_i32_0 : i32, i32
  }
  func.func @transform_3(%arg0: i32) -> (i32, i32) {
    %c0_i32 = arith.constant 0 : i32
    %c0_i32_0 = arith.constant 0 : i32
    %c0_i32_1 = arith.constant 0 : i32
    return %c0_i32, %c0_i32_0 : i32, i32
  }
  func.func @transform_4(%arg0: i32) -> (i32, i32) {
    %c0_i32 = arith.constant 0 : i32
    %c0_i32_0 = arith.constant 0 : i32
    %c0_i32_1 = arith.constant 0 : i32
    return %c0_i32, %c0_i32_0 : i32, i32
  }
  func.func @transform_5(%arg0: i32) -> (i32, i32) {
    %c0_i32 = arith.constant 0 : i32
    %c0_i32_0 = arith.constant 0 : i32
    %c0_i32_1 = arith.constant 0 : i32
    return %c0_i32, %c0_i32_0 : i32, i32
  }
  func.func @transform_6(%arg0: i32) -> (i32, i32) {
    %c0_i32 = arith.constant 0 : i32
    %c0_i32_0 = arith.constant 0 : i32
    %c0_i32_1 = arith.constant 0 : i32
    return %c0_i32, %c0_i32_0 : i32, i32
  }
  func.func @transform_7(%arg0: i32) -> (i32, i32) {
    %c0_i32 = arith.constant 0 : i32
    %c0_i32_0 = arith.constant 0 : i32
    return %arg0, %c0_i32 : i32, i32
  }
}

</mosaic_0001>

<bundles_post_ra>
// kernel: _actor_forward.1
= control target key start
LH: loop header
LB: loop body
LE: loop exit
PB: predicated region body
PF: predicated region fallthrough
CT: control target
= control target key end

     0   :  { %12 = vsyncpa [#allocation3], 0  ;;  %s4975_s0 = inlined_call_operand.vmem [shape: bf16[8,128], index: 0, kind: input, shape index: {}]   ;;  %s4976_s1 = inlined_call_operand.hbm [shape: bf16[128,896], index: 1, kind: input, shape index: {}]   ;;  %s4977_s2 = inlined_call_operand.hbm [shape: f32[1,896], index: 2, kind: input, shape index: {}]   ;;  %s4978_s3 = inlined_call_operand.hbm [shape: bf16[896,640], index: 3, kind: input, shape index: {}]   ;;  %s4979_s4 = inlined_call_operand.hbm [shape: f32[1,640], index: 4, kind: input, shape index: {}]   ;;  %s4980_s5 = inlined_call_operand.hbm [shape: bf16[640,128], index: 5, kind: input, shape index: {}]   ;;  %s4981_s6 = inlined_call_operand.hbm [shape: f32[1,128], index: 6, kind: input, shape index: {}]   ;;  %s4982_s7 = inlined_call_operand.vmem [shape: bf16[8,128], index: 7, kind: output, shape index: {}]  }
   0x1   :  { %13 = vsyncpa [#allocation5], 0 }
   0x2   :  { %14 = vsyncpa [#allocation8], 0 }
   0x3   :  { %15 = vsyncpa [#allocation11], 0  ;;  %s4716_s24 = smov [#allocation4]   ;;  %s4717_s26 = smov [#allocation7]  }
   0x4   :  { %s36_s25 = sshll.u32 %s4716_s24, 4  ;;  %s58_s27 = sshll.u32 %s4717_s26, 4  ;;  %s37_s25 = int_to_ptr.vmem [resolvable:$true] %s36_s25  ;;  %s59_s27 = int_to_ptr.vmem [resolvable:$true] %s58_s27 }
   0x5   :  { %s4576_s30 = scalar_lea.hbm %s4977_s2, 112 }
   0x6   :  { %p4577_p0 = scmp.ne.s32.totalorder %s4977_s2, %s4576_s30  ;;  %p4580_p1 = scmp.lt.u32.totalorder %s4576_s30, %s4977_s2 }
   0x8   :  { %p4582_p2 = pnand %p4580_p1, %p4577_p0 }
   0xa   :  { %4585 = shalt.err (!%p4582_p2)
}
   0xb   :  { %s4586_s12 = scalar_lea.vmem %s37_s25, 112  ;;  %s4590_s13 = scalar_lea.vmem %s37_s25, 128 }
   0xc   :  { %p4587_p3 = scmp.ne.s32.totalorder %s37_s25, %s4586_s12  ;;  %p4591_p4 = scmp.lt.s32.totalorder %s37_s25, %s37_s25 }
   0xd   :  { %p4592_p5 = scmp.lt.s32.totalorder %s4590_s13, %s4586_s12 }
   0xf   :  { %p4593_p6 = por %p4592_p5, %p4591_p4 }
  0x11   :  { %p4594_p7 = pnand %p4593_p6, %p4587_p3 }
  0x13   :  { %4597 = shalt.err (!%p4594_p7)
}
  0x14   :  { %39 = dma.hbm_to_vmem [thread:$0]  %s4977_s2, 112, %s37_s25, [#allocation5]  }
  0x15   :  { %s4598_s18 = scalar_lea.hbm %s4979_s4, 80 }
  0x16   :  { %p4599_p8 = scmp.ne.s32.totalorder %s4979_s4, %s4598_s18  ;;  %p4602_p9 = scmp.lt.u32.totalorder %s4598_s18, %s4979_s4 }
  0x18   :  { %p4604_p10 = pnand %p4602_p9, %p4599_p8 }
  0x1a   :  { %4607 = shalt.err (!%p4604_p10)
}
  0x1b   :  { %s4608_s23 = scalar_lea.vmem %s59_s27, 80  ;;  %s4612_s24 = scalar_lea.vmem %s59_s27, 96 }
  0x1c   :  { %p4609_p11 = scmp.ne.s32.totalorder %s59_s27, %s4608_s23  ;;  %p4613_p12 = scmp.lt.s32.totalorder %s59_s27, %s59_s27 }
  0x1d   :  { %p4614_p13 = scmp.lt.s32.totalorder %s4612_s24, %s4608_s23 }
  0x1f   :  { %p4615_p0 = por %p4614_p13, %p4613_p12 }
  0x21   :  { %p4616_p1 = pnand %p4615_p0, %p4609_p11 }
  0x23   :  { %4619 = shalt.err (!%p4616_p1)
}
  0x24   :  { %61 = dma.hbm_to_vmem [thread:$0]  %s4979_s4, 80, %s59_s27, [#allocation8]  }
  0x25   :  { %s4718_s26 = smov [#allocation2]   ;;  %s4620_s8 = scalar_lea.hbm %s4976_s1, 7168 }
  0x26   :  { %s23_s28 = sshll.u32 %s4718_s26, 4  ;;  %p4621_p2 = scmp.ne.s32.totalorder %s4976_s1, %s4620_s8  ;;  %s24_s28 = int_to_ptr.vmem [resolvable:$true] %s23_s28 }
  0x27   :  { %p4624_p3 = scmp.lt.u32.totalorder %s4620_s8, %s4976_s1 }
  0x29   :  { %p4626_p4 = pnand %p4624_p3, %p4621_p2 }
  0x2b   :  { %4629 = shalt.err (!%p4626_p4)
}
  0x2c   :  { %s4630_s13 = scalar_lea.vmem %s24_s28, 7168  ;;  %p4635_p6 = scmp.lt.s32.totalorder %s24_s28, %s24_s28 }
  0x2d   :  { %p4631_p5 = scmp.ne.s32.totalorder %s24_s28, %s4630_s13  ;;  %p4636_p7 = scmp.lt.s32.totalorder %s4630_s13, %s4630_s13 }
  0x2f   :  { %p4637_p8 = por %p4636_p7, %p4635_p6 }
  0x31   :  { %p4638_p9 = pnand %p4637_p8, %p4631_p5 }
  0x33   :  { %4641 = shalt.err (!%p4638_p9)
}
  0x34   :  { %s4719_s4 = smov 448   ;;  %s4720_s27 = smov 28  }
  0x35   :  { %29 = dma.hbm_to_vmem [thread:$0]  %s4976_s1, 7168, %s24_s28, [#allocation3], %s4719_s4, %s4719_s4, %s4720_s27  }
  0x36   :  { %s4721_s16 = smov [#allocation6]   ;;  %s4642_s20 = scalar_lea.hbm %s4978_s3, 35840 }
  0x37   :  { %s45_s17 = sshll.u32 %s4721_s16, 4  ;;  %p4643_p10 = scmp.ne.s32.totalorder %s4978_s3, %s4642_s20  ;;  %s46_s17 = int_to_ptr.vmem [resolvable:$true] %s45_s17 }
  0x38   :  { %p4646_p11 = scmp.lt.u32.totalorder %s4642_s20, %s4978_s3 }
  0x3a   :  { %p4648_p12 = pnand %p4646_p11, %p4643_p10 }
  0x3c   :  { %4651 = shalt.err (!%p4648_p12)
}
  0x3d   :  { %s4652_s2 = scalar_lea.vmem %s46_s17, 35840  ;;  %p4657_p0 = scmp.lt.s32.totalorder %s46_s17, %s46_s17 }
  0x3e   :  { %p4653_p13 = scmp.ne.s32.totalorder %s46_s17, %s4652_s2  ;;  %p4658_p1 = scmp.lt.s32.totalorder %s4652_s2, %s4652_s2 }
  0x40   :  { %p4659_p2 = por %p4658_p1, %p4657_p0 }
  0x42   :  { %p4660_p3 = pnand %p4659_p2, %p4653_p13 }
  0x44   :  { %4663 = shalt.err (!%p4660_p3)
}
  0x45   :  { %s4722_s1 = smov 320   ;;  %s4723_s25 = smov 20  }
  0x46   :  { %51 = dma.hbm_to_vmem [thread:$0]  %s4978_s3, 35840, %s46_s17, [#allocation5], %s4722_s1, %s4722_s1, %s4723_s25  }
  0x47   :  { %s4724_s29 = smov [#allocation9]   ;;  %s4664_s10 = scalar_lea.hbm %s4980_s5, 5120 }
  0x48   :  { %s67_s30 = sshll.u32 %s4724_s29, 4  ;;  %p4665_p4 = scmp.ne.s32.totalorder %s4980_s5, %s4664_s10  ;;  %s68_s30 = int_to_ptr.vmem [resolvable:$true] %s67_s30 }
  0x49   :  { %p4668_p5 = scmp.lt.u32.totalorder %s4664_s10, %s4980_s5 }
  0x4b   :  { %p4670_p6 = pnand %p4668_p5, %p4665_p4 }
  0x4d   :  { %4673 = shalt.err (!%p4670_p6)
}
  0x4e   :  { %s4674_s27 = scalar_lea.vmem %s68_s30, 5120  ;;  %p4679_p8 = scmp.lt.s32.totalorder %s68_s30, %s68_s30 }
  0x4f   :  { %p4675_p7 = scmp.ne.s32.totalorder %s68_s30, %s4674_s27  ;;  %p4680_p9 = scmp.lt.s32.totalorder %s4674_s27, %s4674_s27 }
  0x51   :  { %p4681_p10 = por %p4680_p9, %p4679_p8 }
  0x53   :  { %p4682_p11 = pnand %p4681_p10, %p4675_p7 }
  0x55   :  { %4685 = shalt.err (!%p4682_p11)
}
  0x56   :  { %s4725_s3 = smov 64   ;;  %s4726_s14 = smov 4  }
  0x57   :  { %73 = dma.hbm_to_vmem [thread:$0]  %s4980_s5, 5120, %s68_s30, [#allocation8], %s4725_s3, %s4725_s3, %s4726_s14  }
  0x58   :  { %s4727_s17 = smov [#allocation10]   ;;  %s4686_s21 = scalar_lea.hbm %s4981_s6, 16 }
  0x59   :  { %s80_s18 = sshll.u32 %s4727_s17, 4  ;;  %p4687_p12 = scmp.ne.s32.totalorder %s4981_s6, %s4686_s21  ;;  %s81_s18 = int_to_ptr.vmem [resolvable:$true] %s80_s18 }
  0x5a   :  { %p4690_p13 = scmp.lt.u32.totalorder %s4686_s21, %s4981_s6 }
  0x5c   :  { %p4692_p0 = pnand %p4690_p13, %p4687_p12 }
  0x5e   :  { %4695 = shalt.err (!%p4692_p0)
}
  0x5f   :  { %s4696_s1 = scalar_lea.vmem %s81_s18, 16  ;;  %s4700_s5 = scalar_lea.vmem %s81_s18, 32 }
  0x60   :  { %p4697_p1 = scmp.ne.s32.totalorder %s81_s18, %s4696_s1  ;;  %p4701_p2 = scmp.lt.s32.totalorder %s81_s18, %s81_s18 }
  0x61   :  { %p4702_p3 = scmp.lt.s32.totalorder %s4700_s5, %s4696_s1 }
  0x63   :  { %p4703_p4 = por %p4702_p3, %p4701_p2 }
  0x65   :  { %p4704_p5 = pnand %p4703_p4, %p4697_p1 }
  0x67   :  { %4707 = shalt.err (!%p4704_p5)
}
  0x68   :  { %83 = dma.hbm_to_vmem [thread:$0]  %s4981_s6, 16, %s81_s18, [#allocation11]  }
  0x69   :  { %4708 = dma.done.wait [#allocation3], 7168  }
  0x6a   :  { %4709 = vsyncadd [#allocation3], 4294960128 }
  0x6b   :  { %4710 = dma.done.wait [#allocation5], 35952  }
  0x6c   :  { %4711 = vsyncadd [#allocation5], 4294931344 }
  0x6d   :  { %4712 = dma.done.wait [#allocation8], 5200  }
  0x6e   :  { %4713 = vsyncadd [#allocation8], 4294962096 }
  0x6f   :  { %4714 = dma.done.wait [#allocation11], 16  }
  0x70   :  { %4715 = vsyncadd [#allocation11], 4294967280  ;;  %v4728_v0 = vmov 0   ;;  %v4062_v1 = vld [vmem:[#allocation2 + $0x4] ss:$28 sps:$4 sm:$0xff]   ;;  %v4729_v43 = vmov 0.0  }
  0x71   :  { %525 = vmatprep.mubr.bf16.mxu0 %v4728_v0  ;;  %566 = vmatprep.mubr.bf16.mxu1 %v4728_v0  ;;  %v4064_v2 = vld [vmem:[#allocation2] ss:$28 sps:$4 sm:$0xff]   ;;  %v4067_v4 = vld [vmem:[#allocation2 + $0x38] ss:$28 sps:$4 sm:$0xff]   ;;  %v4070_v6 = vld [vmem:[#allocation2 + $0x70] ss:$28 sps:$4 sm:$0xff]  }
  0x72   :  { %493 = vmatprep.subr.bf16.mxu0 %v4062_v1  ;;  %v4065_v3 = vld [vmem:[#allocation2 + $0x3c] ss:$28 sps:$4 sm:$0xff]   ;;  %v4068_v5 = vld [vmem:[#allocation2 + $0x74] ss:$28 sps:$4 sm:$0xff]   ;;  %v4071_v7 = vld [vmem:[#allocation2 + $0xac] ss:$28 sps:$4 sm:$0xff]  }
  0x73   :  { %494 = vmatpush1.bf16.msra.mxu0 %v4064_v2  ;;  %v4073_v8 = vld [vmem:[#allocation2 + $0xa8] ss:$28 sps:$4 sm:$0xff]   ;;  %v4076_v13 = vld [vmem:[#allocation2 + $0xe0] ss:$28 sps:$4 sm:$0xff]   ;;  %v4079_v17 = vld [vmem:[#allocation2 + $0x118] ss:$28 sps:$4 sm:$0xff]  }
  0x74   :  { %495 = vmatprep.subr.bf16.mxu0 %v4065_v3  ;;  %v4074_v9 = vld [vmem:[#allocation2 + $0xe4] ss:$28 sps:$4 sm:$0xff]   ;;  %v4086_v10 = vld [vmem:[#allocation2 + $0xc] ss:$28 sps:$4 sm:$0xff]   ;;  %v4092_v15 = vld [vmem:[#allocation2 + $0x7c] ss:$28 sps:$4 sm:$0xff]  }
  0x75   :  { %v4088_v11 = vld [vmem:[#allocation2 + $0x8] ss:$28 sps:$4 sm:$0xff]   ;;  %534 = vmatprep.subr.bf16.mxu1 %v4086_v10  ;;  %v4091_v14 = vld [vmem:[#allocation2 + $0x40] ss:$28 sps:$4 sm:$0xff]   ;;  %v4094_v18 = vld [vmem:[#allocation2 + $0x78] ss:$28 sps:$4 sm:$0xff]  }
  0x76   :  { %v4089_v12 = vld [vmem:[#allocation2 + $0x44] ss:$28 sps:$4 sm:$0xff]   ;;  %535 = vmatpush1.bf16.msra.mxu1 %v4088_v11  ;;  %v4077_v16 = vld [vmem:[#allocation2 + $0x11c] ss:$28 sps:$4 sm:$0xff]   ;;  %v4095_v19 = vld [vmem:[#allocation2 + $0xb4] ss:$28 sps:$4 sm:$0xff]  }
  0x77   :  { %496 = vmatpush1.bf16.msra.mxu0 %v4067_v4  ;;  %536 = vmatprep.subr.bf16.mxu1 %v4089_v12  ;;  %v4080_v20 = vld [vmem:[#allocation2 + $0x154] ss:$28 sps:$4 sm:$0xff]   ;;  %v4098_v23 = vld [vmem:[#allocation2 + $0xec] ss:$28 sps:$4 sm:$0xff]   ;;  %v4101_v27 = vld [vmem:[#allocation2 + $0x124] ss:$28 sps:$4 sm:$0xff]  }
  0x78   :  { %497 = vmatprep.subr.bf16.mxu0 %v4068_v5  ;;  %v4082_v21 = vld [vmem:[#allocation2 + $0x150] ss:$28 sps:$4 sm:$0xff]   ;;  %v4085_v25 = vld [vmem:[#allocation2 + $0x188] ss:$28 sps:$4 sm:$0xff]   ;;  %v4848_v29 = vld [vmem:[%s4975_s0] sm:$0xf] }
  0x79   :  { %v4097_v22 = vld [vmem:[#allocation2 + $0xb0] ss:$28 sps:$4 sm:$0xff]   ;;  %v4100_v26 = vld [vmem:[#allocation2 + $0xe8] ss:$28 sps:$4 sm:$0xff]   ;;  %v4103_v30 = vld [vmem:[#allocation2 + $0x120] ss:$28 sps:$4 sm:$0xff]  }
  0x7a   :  { %537 = vmatpush1.bf16.msra.mxu1 %v4091_v14  ;;  %v4083_v24 = vld [vmem:[#allocation2 + $0x18c] ss:$28 sps:$4 sm:$0xff]   ;;  %v4112_v28 = vld [vmem:[#allocation2 + $0x14] ss:$28 sps:$4 sm:$0xff]   ;;  %v4104_v31 = vld [vmem:[#allocation2 + $0x15c] ss:$28 sps:$4 sm:$0xff]  }
  0x7b   :  { %498 = vmatpush1.bf16.msra.mxu0 %v4070_v6  ;;  %538 = vmatprep.subr.bf16.mxu1 %v4092_v15  ;;  %v4110_v32 = vld [vmem:[#allocation2 + $0x10] ss:$28 sps:$4 sm:$0xff]   ;;  %v4106_v34 = vld [vmem:[#allocation2 + $0x158] ss:$28 sps:$4 sm:$0xff]   ;;  %v4113_v36 = vld [vmem:[#allocation2 + $0x48] ss:$28 sps:$4 sm:$0xff]  }
  0x7c   :  { %499 = vmatprep.subr.bf16.mxu0 %v4071_v7  ;;  %v4115_v33 = vld [vmem:[#allocation2 + $0x4c] ss:$28 sps:$4 sm:$0xff]   ;;  %v4107_v35 = vld [vmem:[#allocation2 + $0x194] ss:$28 sps:$4 sm:$0xff]   ;;  %v4118_v37 = vld [vmem:[#allocation2 + $0x84] ss:$28 sps:$4 sm:$0xff]  }
  0x7d   :  { %v4109_v38 = vld [vmem:[#allocation2 + $0x190] ss:$28 sps:$4 sm:$0xff]   ;;  %v4116_v39 = vld [vmem:[#allocation2 + $0x80] ss:$28 sps:$4 sm:$0xff]   ;;  %v4134_v41 = vld [vmem:[#allocation2 + $0x18] ss:$28 sps:$4 sm:$0xff]  }
  0x7e   :  { %539 = vmatpush1.bf16.msra.mxu1 %v4094_v18  ;;  %v4121_v40 = vld [vmem:[#allocation2 + $0xbc] ss:$28 sps:$4 sm:$0xff]   ;;  %v4124_v44 = vld [vmem:[#allocation2 + $0xf4] ss:$28 sps:$4 sm:$0xff]   ;;  %vm4730_vm0 = vmmov 0  }
  0x7f   :  { %500 = vmatpush1.bf16.msra.mxu0 %v4073_v8  ;;  %540 = vmatprep.subr.bf16.mxu1 %v4095_v19  ;;  %v4119_v42 = vld [vmem:[#allocation2 + $0xb8] ss:$28 sps:$4 sm:$0xff]   ;;  %v4135_v45 = vld [vmem:[#allocation2 + $0x50] ss:$28 sps:$4 sm:$0xff]   ;;  %v4136_v48 = vld [vmem:[#allocation2 + $0x88] ss:$28 sps:$4 sm:$0xff]  }
  0x80   :  { %501 = vmatprep.subr.bf16.mxu0 %v4074_v9  ;;  %v4122_v46 = vld [vmem:[#allocation2 + $0xf0] ss:$28 sps:$4 sm:$0xff]   ;;  %v4125_v49 = vld [vmem:[#allocation2 + $0x128] ss:$28 sps:$4 sm:$0xff]   ;;  %v4137_v51 = vld [vmem:[#allocation2 + $0xc0] ss:$28 sps:$4 sm:$0xff]  }
  0x81   :  { %v4127_v47 = vld [vmem:[#allocation2 + $0x12c] ss:$28 sps:$4 sm:$0xff]   ;;  %v4130_v50 = vld [vmem:[#allocation2 + $0x164] ss:$28 sps:$4 sm:$0xff]   ;;  %v4133_v53 = vld [vmem:[#allocation2 + $0x19c] ss:$28 sps:$4 sm:$0xff]  }
  0x82   :  { %541 = vmatpush1.bf16.msra.mxu1 %v4097_v22  ;;  %v4128_v52 = vld [vmem:[#allocation2 + $0x160] ss:$28 sps:$4 sm:$0xff]   ;;  %v4138_v54 = vld [vmem:[#allocation2 + $0xf8] ss:$28 sps:$4 sm:$0xff]   ;;  %v4139_v57 = vld [vmem:[#allocation2 + $0x130] ss:$28 sps:$4 sm:$0xff]  }
  0x83   :  { %502 = vmatpush1.bf16.msra.mxu0 %v4076_v13  ;;  %542 = vmatprep.subr.bf16.mxu1 %v4098_v23  ;;  %v4131_v55 = vld [vmem:[#allocation2 + $0x198] ss:$28 sps:$4 sm:$0xff]   ;;  %v4144_v56 = vld [vmem:[#allocation6 + $0x4] ss:$20 sps:$4 sm:$0xff]   ;;  %v4142_v58 = vld [vmem:[#allocation6] ss:$20 sps:$4 sm:$0xff]  }
  0x84   :  { %503 = vmatprep.subr.bf16.mxu0 %v4077_v16  ;;  %v4150_v59 = vld [vmem:[#allocation6 + $0x2c] ss:$20 sps:$4 sm:$0xff]   ;;  %v4148_v61 = vld [vmem:[#allocation6 + $0x28] ss:$20 sps:$4 sm:$0xff]   ;;  %v4141_v63 = vld [vmem:[#allocation2 + $0x1a0] ss:$28 sps:$4 sm:$0xff]  }
  0x85   :  { %v4140_v60 = vld [vmem:[#allocation2 + $0x168] ss:$28 sps:$4 sm:$0xff]   ;;  %v4156_v62 = vld [vmem:[#allocation6 + $0x54] ss:$20 sps:$4 sm:$0xff]   ;;  %v4154_v2 = vld [vmem:[#allocation6 + $0x50] ss:$20 sps:$4 sm:$0xff]  }
  0x86   :  { %543 = vmatpush1.bf16.msra.mxu1 %v4100_v26  ;;  %v4147_v1 = vld [vmem:[#allocation6 + $0xc] ss:$20 sps:$4 sm:$0xff]   ;;  %v4162_v3 = vld [vmem:[#allocation6 + $0x7c] ss:$20 sps:$4 sm:$0xff]   ;;  %v4153_v5 = vld [vmem:[#allocation6 + $0x34] ss:$20 sps:$4 sm:$0xff]  }
  0x87   :  { %504 = vmatpush1.bf16.msra.mxu0 %v4079_v17  ;;  %544 = vmatprep.subr.bf16.mxu1 %v4101_v27  ;;  %v4145_v4 = vld [vmem:[#allocation6 + $0x8] ss:$20 sps:$4 sm:$0xff]   ;;  %v4160_v6 = vld [vmem:[#allocation6 + $0x78] ss:$20 sps:$4 sm:$0xff]   ;;  %v4151_v8 = vld [vmem:[#allocation6 + $0x30] ss:$20 sps:$4 sm:$0xff]  }
  0x88   :  { %505 = vmatprep.subr.bf16.mxu0 %v4080_v20  ;;  %v4168_v7 = vld [vmem:[#allocation6 + $0xa4] ss:$20 sps:$4 sm:$0xff]   ;;  %v4159_v9 = vld [vmem:[#allocation6 + $0x5c] ss:$20 sps:$4 sm:$0xff]   ;;  %v4166_v10 = vld [vmem:[#allocation6 + $0xa0] ss:$20 sps:$4 sm:$0xff]  }
  0x89   :  { %v4174_v11 = vld [vmem:[#allocation6 + $0xcc] ss:$20 sps:$4 sm:$0xff]   ;;  %v4165_v13 = vld [vmem:[#allocation6 + $0x84] ss:$20 sps:$4 sm:$0xff]   ;;  %v4172_v14 = vld [vmem:[#allocation6 + $0xc8] ss:$20 sps:$4 sm:$0xff]  }
  0x8a   :  { %545 = vmatpush1.bf16.msra.mxu1 %v4103_v30  ;;  %v4157_v12 = vld [vmem:[#allocation6 + $0x58] ss:$20 sps:$4 sm:$0xff]   ;;  %v4180_v15 = vld [vmem:[#allocation6 + $0xf4] ss:$20 sps:$4 sm:$0xff]   ;;  %v4178_v18 = vld [vmem:[#allocation6 + $0xf0] ss:$20 sps:$4 sm:$0xff]  }
  0x8b   :  { %506 = vmatpush1.bf16.msra.mxu0 %v4082_v21  ;;  %546 = vmatprep.subr.bf16.mxu1 %v4104_v31  ;;  %v4163_v16 = vld [vmem:[#allocation6 + $0x80] ss:$20 sps:$4 sm:$0xff]   ;;  %v4186_v19 = vld [vmem:[#allocation6 + $0x11c] ss:$20 sps:$4 sm:$0xff]   ;;  %v4184_v22 = vld [vmem:[#allocation6 + $0x118] ss:$20 sps:$4 sm:$0xff]  }
  0x8c   :  { %507 = vmatprep.subr.bf16.mxu0 %v4083_v24  ;;  %v4171_v17 = vld [vmem:[#allocation6 + $0xac] ss:$20 sps:$4 sm:$0xff]   ;;  %v4169_v20 = vld [vmem:[#allocation6 + $0xa8] ss:$20 sps:$4 sm:$0xff]   ;;  %v4192_v23 = vld [vmem:[#allocation6 + $0x144] ss:$20 sps:$4 sm:$0xff]  }
  0x8d   :  { %v4177_v21 = vld [vmem:[#allocation6 + $0xd4] ss:$20 sps:$4 sm:$0xff]   ;;  %v4175_v24 = vld [vmem:[#allocation6 + $0xd0] ss:$20 sps:$4 sm:$0xff]   ;;  %v4198_v27 = vld [vmem:[#allocation6 + $0x16c] ss:$20 sps:$4 sm:$0xff]  }
  0x8e   :  { %547 = vmatpush1.bf16.msra.mxu1 %v4106_v34  ;;  %v4190_v26 = vld [vmem:[#allocation6 + $0x140] ss:$20 sps:$4 sm:$0xff]   ;;  %v4196_v30 = vld [vmem:[#allocation6 + $0x168] ss:$20 sps:$4 sm:$0xff]   ;;  %v4202_v34 = vld [vmem:[#allocation6 + $0x190] ss:$20 sps:$4 sm:$0xff]  }
  0x8f   :  { %508 = vmatpush1.bf16.msra.mxu0 %v4085_v25  ;;  %548 = vmatprep.subr.bf16.mxu1 %v4107_v35  ;;  %v4183_v25 = vld [vmem:[#allocation6 + $0xfc] ss:$20 sps:$4 sm:$0xff]   ;;  %v4204_v31 = vld [vmem:[#allocation6 + $0x194] ss:$20 sps:$4 sm:$0xff]  }
  0x90   :  { %575 = vmatprep.subr.bf16.mxu0 %v4112_v28  ;;  %v4181_v28 = vld [vmem:[#allocation6 + $0xf8] ss:$20 sps:$4 sm:$0xff]   ;;  %v4210_v35 = vld [vmem:[#allocation6 + $0x1bc] ss:$20 sps:$4 sm:$0xff]  }
  0x92   :  { %526 = vmatmul.mubr.bf16.vlgmr.msra.gmra.mrb[0].mxu0 %v4848_v29  ;;  %549 = vmatpush1.bf16.msra.mxu1 %v4109_v38  ;;  %v4208_v38 = vld [vmem:[#allocation6 + $0x1b8] ss:$20 sps:$4 sm:$0xff]  }
  0x93   :  { %576 = vmatpush1.bf16.msra.mxu0 %v4110_v32  ;;  %607 = vmatprep.mubr.bf16.mxu0 %v4728_v0  ;;  %v4187_v32 = vld [vmem:[#allocation6 + $0x120] ss:$20 sps:$4 sm:$0xff]  }
  0x94   :  { %577 = vmatprep.subr.bf16.mxu0 %v4115_v33  ;;  %3959 = vmatprep.subr.bf16.mxu1 %v4729_v43  ;;  %v4195_v33 = vld [vmem:[#allocation6 + $0x14c] ss:$20 sps:$4 sm:$0xff]  }
  0x95   :  { %567 = vmatmul.mubr.bf16.vlgmr.msra.gmra.mrb[0].mxu1 %v4848_v29 }
  0x96   :  { %3960 = vmatpush3.bf16.msra.mxu1 %v4134_v41  ;;  %3975 = vmatprep.mubr.msk.bf16.mxu1 %vm4730_vm0, %v4729_v43  ;;  %v4207_v41 = vld [vmem:[#allocation6 + $0x19c] ss:$20 sps:$4 sm:$0xff]  }
  0x97   :  { %578 = vmatpush1.bf16.msra.mxu0 %v4113_v36  ;;  %3961 = vmatprep.subr.bf16.mxu1 %v4729_v43  ;;  %v4193_v36 = vld [vmem:[#allocation6 + $0x148] ss:$20 sps:$4 sm:$0xff]  }
  0x98   :  { %579 = vmatprep.subr.bf16.mxu0 %v4118_v37  ;;  %v4201_v37 = vld [vmem:[#allocation6 + $0x174] ss:$20 sps:$4 sm:$0xff]  }
  0x9a   :  { %3962 = vmatpush3.bf16.msra.mxu1 %v4135_v45  ;;  %v4205_v45 = vld [vmem:[#allocation6 + $0x198] ss:$20 sps:$4 sm:$0xff]  }
  0x9b   :  { %580 = vmatpush1.bf16.msra.mxu0 %v4116_v39  ;;  %3963 = vmatprep.subr.bf16.mxu1 %v4729_v43  ;;  %v4216_v39 = vld [vmem:[#allocation6 + $0x1e4] ss:$20 sps:$4 sm:$0xff]  }
  0x9c   :  { %581 = vmatprep.subr.bf16.mxu0 %v4121_v40  ;;  %v4199_v40 = vld [vmem:[#allocation6 + $0x170] ss:$20 sps:$4 sm:$0xff]  }
  0x9e   :  { %3964 = vmatpush3.bf16.msra.mxu1 %v4136_v48  ;;  %v4211_v48 = vld [vmem:[#allocation6 + $0x1c0] ss:$20 sps:$4 sm:$0xff]  }
  0x9f   :  { %582 = vmatpush1.bf16.msra.mxu0 %v4119_v42  ;;  %3965 = vmatprep.subr.bf16.mxu1 %v4729_v43  ;;  %v4214_v42 = vld [vmem:[#allocation6 + $0x1e0] ss:$20 sps:$4 sm:$0xff]  }
  0xa0   :  { %583 = vmatprep.subr.bf16.mxu0 %v4124_v44  ;;  %v4222_v44 = vld [vmem:[#allocation6 + $0x20c] ss:$20 sps:$4 sm:$0xff]  }
  0xa2   :  { %3966 = vmatpush3.bf16.msra.mxu1 %v4137_v51  ;;  %v4226_v51 = vld [vmem:[#allocation6 + $0x230] ss:$20 sps:$4 sm:$0xff]  }
  0xa3   :  { %584 = vmatpush1.bf16.msra.mxu0 %v4122_v46  ;;  %3967 = vmatprep.subr.bf16.mxu1 %v4729_v43  ;;  %v4213_v46 = vld [vmem:[#allocation6 + $0x1c4] ss:$20 sps:$4 sm:$0xff]  }
  0xa4   :  { %585 = vmatprep.subr.bf16.mxu0 %v4127_v47  ;;  %v4220_v47 = vld [vmem:[#allocation6 + $0x208] ss:$20 sps:$4 sm:$0xff]  }
  0xa6   :  { %3968 = vmatpush3.bf16.msra.mxu1 %v4138_v54  ;;  %v4225_v54 = vld [vmem:[#allocation6 + $0x214] ss:$20 sps:$4 sm:$0xff]  }
  0xa7   :  { %586 = vmatpush1.bf16.msra.mxu0 %v4125_v49  ;;  %3969 = vmatprep.subr.bf16.mxu1 %v4729_v43  ;;  %v4228_v49 = vld [vmem:[#allocation6 + $0x234] ss:$20 sps:$4 sm:$0xff]  }
  0xa8   :  { %587 = vmatprep.subr.bf16.mxu0 %v4130_v50  ;;  %v4219_v50 = vld [vmem:[#allocation6 + $0x1ec] ss:$20 sps:$4 sm:$0xff]  }
  0xaa   :  { %3970 = vmatpush3.bf16.msra.mxu1 %v4139_v57  ;;  %v4240_v57 = vld [vmem:[#allocation6 + $0x284] ss:$20 sps:$4 sm:$0xff]  }
  0xab   :  { %588 = vmatpush1.bf16.msra.mxu0 %v4128_v52  ;;  %3971 = vmatprep.subr.bf16.mxu1 %v4729_v43  ;;  %v4217_v52 = vld [vmem:[#allocation6 + $0x1e8] ss:$20 sps:$4 sm:$0xff]  }
  0xac   :  { %589 = vmatprep.subr.bf16.mxu0 %v4133_v53  ;;  %v4234_v53 = vld [vmem:[#allocation6 + $0x25c] ss:$20 sps:$4 sm:$0xff]  }
  0xae   :  { %3972 = vmatpush3.bf16.msra.mxu1 %v4140_v60  ;;  %v4237_v60 = vld [vmem:[#allocation6 + $0x264] ss:$20 sps:$4 sm:$0xff]  }
  0xaf   :  { %590 = vmatpush1.bf16.msra.mxu0 %v4131_v55  ;;  %3973 = vmatprep.subr.bf16.mxu1 %v4729_v43  ;;  %v4232_v55 = vld [vmem:[#allocation6 + $0x258] ss:$20 sps:$4 sm:$0xff]  }
  0xb0   :  { %2489 = vmatprep.subr.bf16.mxu0 %v4144_v56  ;;  %v4223_v56 = vld [vmem:[#allocation6 + $0x210] ss:$20 sps:$4 sm:$0xff]  }
  0xb2   :  { %608 = vmatmul.mubr.bf16.vlgmr.msra.gmra.mrb[4].mxu0 %v4848_v29  ;;  %3974 = vmatpush3.bf16.msra.mxu1 %v4141_v63  ;;  %v170_v63 = vlaneseq }
  0xb3   :  { %2490 = vmatpush1.bf16.msra.mxu0 %v4142_v58  ;;  %2653 = vmatprep.subr.bf16.mxu1 %v4147_v1  ;;  %v4231_v58 = vld [vmem:[#allocation6 + $0x23c] ss:$20 sps:$4 sm:$0xff]  }
  0xb4   :  { %2491 = vmatprep.subr.bf16.mxu0 %v4150_v59  ;;  %v4229_v59 = vld [vmem:[#allocation6 + $0x238] ss:$20 sps:$4 sm:$0xff]   ;;  %v4865_v1 = vshrl.u32 %v170_v63, 7  ;;  %v4286_v63 = vld [vmem:[#allocation6 + $0x3c0] ss:$20 sps:$4 sm:$0xff]  }
  0xb5   :  { %3976 = vmatmul.mubr.bf16.vlgmr.msra.gmra.mrb[4].mxu1 %v4848_v29  ;;  %v4189_v29 = vld [vmem:[#allocation6 + $0x124] ss:$20 sps:$4 sm:$0xff]  }
  0xb6   :  { %2654 = vmatpush1.bf16.msra.mxu1 %v4145_v4  ;;  %v176_v4 = vsub.s32 1, %v4865_v1 }
  0xb7   :  { %2492 = vmatpush1.bf16.msra.mxu0 %v4148_v61  ;;  %2655 = vmatprep.subr.bf16.mxu1 %v4153_v5  ;;  %v4235_v61 = vld [vmem:[#allocation6 + $0x260] ss:$20 sps:$4 sm:$0xff]  }
  0xb8   :  { %2493 = vmatprep.subr.bf16.mxu0 %v4156_v62  ;;  %v4243_v62 = vld [vmem:[#allocation6 + $0x28c] ss:$20 sps:$4 sm:$0xff]  }
  0xba   :  { %2656 = vmatpush1.bf16.msra.mxu1 %v4151_v8 }
  0xbb   :  { %2494 = vmatpush1.bf16.msra.mxu0 %v4154_v2  ;;  %2657 = vmatprep.subr.bf16.mxu1 %v4159_v9  ;;  %v172_v2 = vsub.s32 0, %v4865_v1 }
  0xbc   :  { %2495 = vmatprep.subr.bf16.mxu0 %v4162_v3  ;;  %v4868_v3 = vld [vmem:[#allocation4] sm:$0xff] }
  0xbd   :  { %v173_v5 = vrot.slane %v4868_v3, %v172_v2 }
  0xbe   :  { %2658 = vmatpush1.bf16.msra.mxu1 %v4157_v12 }
  0xbf   :  { %2496 = vmatpush1.bf16.msra.mxu0 %v4160_v6  ;;  %2659 = vmatprep.subr.bf16.mxu1 %v4165_v13  ;;  %v177_v6 = vrot.slane %v4868_v3, %v176_v4 }
  0xc0   :  { %2497 = vmatprep.subr.bf16.mxu0 %v4168_v7 }
  0xc2   :  { %2660 = vmatpush1.bf16.msra.mxu1 %v4163_v16 }
  0xc3   :  { %2498 = vmatpush1.bf16.msra.mxu0 %v4166_v10  ;;  %2661 = vmatprep.subr.bf16.mxu1 %v4171_v17  ;;  %v4238_v17 = vld [vmem:[#allocation6 + $0x280] ss:$20 sps:$4 sm:$0xff]  }
  0xc4   :  { %2499 = vmatprep.subr.bf16.mxu0 %v4174_v11 }
  0xc6   :  { %2662 = vmatpush1.bf16.msra.mxu1 %v4169_v20  ;;  %v4246_v20 = vld [vmem:[#allocation6 + $0x2ac] ss:$20 sps:$4 sm:$0xff]  }
  0xc7   :  { %2500 = vmatpush1.bf16.msra.mxu0 %v4172_v14  ;;  %2663 = vmatprep.subr.bf16.mxu1 %v4177_v21  ;;  %v4249_v21 = vld [vmem:[#allocation6 + $0x2b4] ss:$20 sps:$4 sm:$0xff]  }
  0xc8   :  { %2501 = vmatprep.subr.bf16.mxu0 %v4180_v15  ;;  %v184_v15 = vsub.s32 3, %v4865_v1 }
  0xca   :  { %2664 = vmatpush1.bf16.msra.mxu1 %v4175_v24  ;;  %v4247_v24 = vld [vmem:[#allocation6 + $0x2b0] ss:$20 sps:$4 sm:$0xff]  }
  0xcb   :  { %2502 = vmatpush1.bf16.msra.mxu0 %v4178_v18  ;;  %2665 = vmatprep.subr.bf16.mxu1 %v4183_v25  ;;  %v4241_v18 = vld [vmem:[#allocation6 + $0x288] ss:$20 sps:$4 sm:$0xff]  }
  0xcc   :  { %2503 = vmatprep.subr.bf16.mxu0 %v4186_v19  ;;  %v4252_v25 = vld [vmem:[#allocation6 + $0x2d4] ss:$20 sps:$4 sm:$0xff]  }
  0xce   :  { %2666 = vmatpush1.bf16.msra.mxu1 %v4181_v28 }
  0xcf   :  { %2504 = vmatpush1.bf16.msra.mxu0 %v4184_v22  ;;  %2667 = vmatprep.subr.bf16.mxu1 %v4189_v29  ;;  %v185_v22 = vrot.slane %v4868_v3, %v184_v15 }
  0xd0   :  { %2505 = vmatprep.subr.bf16.mxu0 %v4192_v23  ;;  %v4244_v23 = vld [vmem:[#allocation6 + $0x2a8] ss:$20 sps:$4 sm:$0xff]  }
  0xd2   :  { %2668 = vmatpush1.bf16.msra.mxu1 %v4187_v32  ;;  %v4253_v32 = vld [vmem:[#allocation6 + $0x2d8] ss:$20 sps:$4 sm:$0xff]  }
  0xd3   :  { %2506 = vmatpush1.bf16.msra.mxu0 %v4190_v26  ;;  %2669 = vmatprep.subr.bf16.mxu1 %v4195_v33  ;;  %v4255_v26 = vld [vmem:[#allocation6 + $0x2dc] ss:$20 sps:$4 sm:$0xff]  }
  0xd4   :  { %2507 = vmatprep.subr.bf16.mxu0 %v4198_v27 }
  0xd6   :  { %2670 = vmatpush1.bf16.msra.mxu1 %v4193_v36 }
  0xd7   :  { %2508 = vmatpush1.bf16.msra.mxu0 %v4196_v30  ;;  %2671 = vmatprep.subr.bf16.mxu1 %v4201_v37 }
  0xd8   :  { %2509 = vmatprep.subr.bf16.mxu0 %v4204_v31  ;;  %v4250_v31 = vld [vmem:[#allocation6 + $0x2d0] ss:$20 sps:$4 sm:$0xff]  }
  0xda   :  { %2672 = vmatpush1.bf16.msra.mxu1 %v4199_v40  ;;  %v4264_v40 = vld [vmem:[#allocation6 + $0x324] ss:$20 sps:$4 sm:$0xff]  }
  0xdb   :  { %2510 = vmatpush1.bf16.msra.mxu0 %v4202_v34  ;;  %2673 = vmatprep.subr.bf16.mxu1 %v4207_v41  ;;  %v4258_v34 = vld [vmem:[#allocation6 + $0x2fc] ss:$20 sps:$4 sm:$0xff]   ;;  %v4267_v41 = vld [vmem:[#allocation6 + $0x32c] ss:$20 sps:$4 sm:$0xff]  }
  0xdc   :  { %2511 = vmatprep.subr.bf16.mxu0 %v4210_v35  ;;  %v4261_v35 = vld [vmem:[#allocation6 + $0x304] ss:$20 sps:$4 sm:$0xff]  }
  0xde   :  { %2674 = vmatpush1.bf16.msra.mxu1 %v4205_v45  ;;  %v4270_v45 = vld [vmem:[#allocation6 + $0x34c] ss:$20 sps:$4 sm:$0xff]  }
  0xdf   :  { %2512 = vmatpush1.bf16.msra.mxu0 %v4208_v38  ;;  %2675 = vmatprep.subr.bf16.mxu1 %v4213_v46  ;;  %v4256_v38 = vld [vmem:[#allocation6 + $0x2f8] ss:$20 sps:$4 sm:$0xff]   ;;  %v4273_v46 = vld [vmem:[#allocation6 + $0x354] ss:$20 sps:$4 sm:$0xff]  }
  0xe0   :  { %2513 = vmatprep.subr.bf16.mxu0 %v4216_v39  ;;  %v4259_v39 = vld [vmem:[#allocation6 + $0x300] ss:$20 sps:$4 sm:$0xff]  }
  0xe2   :  { %2676 = vmatpush1.bf16.msra.mxu1 %v4211_v48  ;;  %v4271_v48 = vld [vmem:[#allocation6 + $0x350] ss:$20 sps:$4 sm:$0xff]  }
  0xe3   :  { %2514 = vmatpush1.bf16.msra.mxu0 %v4214_v42  ;;  %2677 = vmatprep.subr.bf16.mxu1 %v4219_v50  ;;  %v4262_v42 = vld [vmem:[#allocation6 + $0x320] ss:$20 sps:$4 sm:$0xff]   ;;  %v4279_v50 = vld [vmem:[#allocation6 + $0x37c] ss:$20 sps:$4 sm:$0xff]  }
  0xe4   :  { %2515 = vmatprep.subr.bf16.mxu0 %v4222_v44  ;;  %v4265_v44 = vld [vmem:[#allocation6 + $0x328] ss:$20 sps:$4 sm:$0xff]  }
  0xe6   :  { %2678 = vmatpush1.bf16.msra.mxu1 %v4217_v52  ;;  %v4277_v52 = vld [vmem:[#allocation6 + $0x378] ss:$20 sps:$4 sm:$0xff]  }
  0xe7   :  { %2516 = vmatpush1.bf16.msra.mxu0 %v4220_v47  ;;  %2679 = vmatprep.subr.bf16.mxu1 %v4225_v54  ;;  %v4268_v47 = vld [vmem:[#allocation6 + $0x348] ss:$20 sps:$4 sm:$0xff]   ;;  %v4285_v54 = vld [vmem:[#allocation6 + $0x3a4] ss:$20 sps:$4 sm:$0xff]  }
  0xe8   :  { %2517 = vmatprep.subr.bf16.mxu0 %v4228_v49  ;;  %v4276_v49 = vld [vmem:[#allocation6 + $0x374] ss:$20 sps:$4 sm:$0xff]  }
  0xea   :  { %2680 = vmatpush1.bf16.msra.mxu1 %v4223_v56 }
  0xeb   :  { %2518 = vmatpush1.bf16.msra.mxu0 %v4226_v51  ;;  %2681 = vmatprep.subr.bf16.mxu1 %v4231_v58  ;;  %v4274_v51 = vld [vmem:[#allocation6 + $0x370] ss:$20 sps:$4 sm:$0xff]   ;;  %v4283_v58 = vld [vmem:[#allocation6 + $0x3a0] ss:$20 sps:$4 sm:$0xff]  }
  0xec   :  { %2519 = vmatprep.subr.bf16.mxu0 %v4234_v53  ;;  %v4282_v53 = vld [vmem:[#allocation6 + $0x39c] ss:$20 sps:$4 sm:$0xff]  }
  0xee   :  { %2682 = vmatpush1.bf16.msra.mxu1 %v4229_v59 }
  0xef   :  { %2520 = vmatpush1.bf16.msra.mxu0 %v4232_v55  ;;  %2683 = vmatprep.subr.bf16.mxu1 %v4237_v60  ;;  %v4288_v60 = vld [vmem:[#allocation6 + $0x3c4] ss:$20 sps:$4 sm:$0xff]  }
  0xf0   :  { %2530 = vmatprep.subr.bf16.mxu0 %v4240_v57  ;;  %v4280_v57 = vld [vmem:[#allocation6 + $0x398] ss:$20 sps:$4 sm:$0xff]  }
  0xf2   :  { %2684 = vmatpush1.bf16.msra.mxu1 %v4235_v61  ;;  %v4291_v61 = vld [vmem:[#allocation6 + $0x3cc] ss:$20 sps:$4 sm:$0xff]  }
  0xf3   :  { %2694 = vmatprep.subr.bf16.mxu1 %v4243_v62 }
 0x165   :  { %v527_v7 = vpop.f32.mrb[0].mxu0 }
 0x166   :  { %v528_v8 = vadd.f32 %v527_v7, %v173_v5  ;;  %v529_v9 = vpop.f32.mrb[1].mxu0  ;;  %v4289_v5 = vld [vmem:[#allocation6 + $0x3c8] ss:$20 sps:$4 sm:$0xff]  }
 0x167   :  { %v530_v10 = vadd.f32 %v529_v9, %v177_v6  ;;  %v531_v11 = vpop.f32.mrb[2].mxu0  ;;  %v4294_v6 = vld [vmem:[#allocation6 + $0x3ec] ss:$20 sps:$4 sm:$0xff]   ;;  %v4297_v7 = vld [vmem:[#allocation6 + $0x3f4] ss:$20 sps:$4 sm:$0xff]  }
 0x168   :  { %v656_v12 = vmax.f32 %v528_v8, 0.0  ;;  %v532_v13 = vpop.f32.mrb[3].mxu0  ;;  %v4889_v27 = vpop.f32.mrb[0].mxu1  ;;  %v4292_v8 = vld [vmem:[#allocation6 + $0x3e8] ss:$20 sps:$4 sm:$0xff]  }
 0x169   :  { %v657_v14 = vmax.f32 %v530_v10, 0.0  ;;  %v570_v28 = vpop.f32.mrb[1].mxu1  ;;  %v4295_v9 = vld [vmem:[#allocation6 + $0x3f0] ss:$20 sps:$4 sm:$0xff]   ;;  %v4300_v10 = vld [vmem:[#allocation6 + $0x414] ss:$20 sps:$4 sm:$0xff]  }
 0x16a   :  { %v4880_v19 = vpack.c.bf16 %v656_v12, %v656_v12  ;;  %v571_v29 = vadd.f32 %v570_v28, %v185_v22  ;;  %v572_v30 = vpop.f32.mrb[2].mxu1  ;;  %v4303_v11 = vld [vmem:[#allocation6 + $0x41c] ss:$20 sps:$4 sm:$0xff]   ;;  %v4309_v22 = vld [vmem:[#allocation6 + $0x444] ss:$20 sps:$4 sm:$0xff]   ;;  %v180_v28 = vsub.s32 2, %v4865_v1 }
 0x16b   :  { %v4878_v16 = vpack.c.bf16 %v657_v14, %v657_v14  ;;  %v573_v33 = vpop.f32.mrb[3].mxu1  ;;  %v4313_v30 = vld [vmem:[#allocation6 + $0x468] ss:$20 sps:$4 sm:$0xff]  }
 0x16c   :  { %v659_v36 = vmax.f32 %v571_v29, 0.0  ;;  %v4310_v29 = vld [vmem:[#allocation6 + $0x460] ss:$20 sps:$4 sm:$0xff]   ;;  %v192_v33 = vsub.s32 5, %v4865_v1 }
 0x16d   :  { %2521 = vmatprep.mubr.bf16.mxu0 %v4878_v16  ;;  %2685 = vmatprep.mubr.bf16.mxu1 %v4878_v16 }
 0x16e   :  { %2522 = vmatmul.mubr.bf16.vlgmr.msra.gmra.mrb[8].mxu0 %v4880_v19  ;;  %2686 = vmatmul.mubr.bf16.vlgmr.msra.gmra.mrb[8].mxu1 %v4880_v19  ;;  %v4891_v37 = vpack.c.bf16 %v659_v36, %v659_v36  ;;  %v4319_v36 = vld [vmem:[#allocation6 + $0x490] ss:$20 sps:$4 sm:$0xff]  }
 0x16f   :  { %2531 = vmatpush1.bf16.msra.mxu0 %v4238_v17  ;;  %2695 = vmatpush1.bf16.msra.mxu1 %v4241_v18  ;;  %v4298_v17 = vld [vmem:[#allocation6 + $0x410] ss:$20 sps:$4 sm:$0xff]   ;;  %v4301_v18 = vld [vmem:[#allocation6 + $0x418] ss:$20 sps:$4 sm:$0xff]  }
 0x170   :  { %2532 = vmatprep.subr.bf16.mxu0 %v4246_v20  ;;  %2696 = vmatprep.subr.bf16.mxu1 %v4249_v21  ;;  %v4306_v21 = vld [vmem:[#allocation6 + $0x43c] ss:$20 sps:$4 sm:$0xff]  }
 0x171   :  { %2562 = vmatprep.mubr.bf16.mxu0 %v4891_v37  ;;  %2726 = vmatprep.mubr.bf16.mxu1 %v4891_v37 }
 0x173   :  { %2533 = vmatpush1.bf16.msra.mxu0 %v4244_v23  ;;  %2697 = vmatpush1.bf16.msra.mxu1 %v4247_v24  ;;  %v4304_v23 = vld [vmem:[#allocation6 + $0x438] ss:$20 sps:$4 sm:$0xff]   ;;  %v4307_v24 = vld [vmem:[#allocation6 + $0x440] ss:$20 sps:$4 sm:$0xff]  }
 0x174   :  { %2534 = vmatprep.subr.bf16.mxu0 %v4252_v25  ;;  %2698 = vmatprep.subr.bf16.mxu1 %v4255_v26  ;;  %v4312_v25 = vld [vmem:[#allocation6 + $0x464] ss:$20 sps:$4 sm:$0xff]   ;;  %v4315_v26 = vld [vmem:[#allocation6 + $0x46c] ss:$20 sps:$4 sm:$0xff]  }
 0x177   :  { %2535 = vmatpush1.bf16.msra.mxu0 %v4250_v31  ;;  %2699 = vmatpush1.bf16.msra.mxu1 %v4253_v32  ;;  %v4318_v31 = vld [vmem:[#allocation6 + $0x48c] ss:$20 sps:$4 sm:$0xff]   ;;  %v4321_v32 = vld [vmem:[#allocation6 + $0x494] ss:$20 sps:$4 sm:$0xff]  }
 0x178   :  { %2536 = vmatprep.subr.bf16.mxu0 %v4258_v34  ;;  %2700 = vmatprep.subr.bf16.mxu1 %v4261_v35  ;;  %v181_v34 = vrot.slane %v4868_v3, %v180_v28  ;;  %v4316_v35 = vld [vmem:[#allocation6 + $0x488] ss:$20 sps:$4 sm:$0xff]  }
 0x17b   :  { %2537 = vmatpush1.bf16.msra.mxu0 %v4256_v38  ;;  %2701 = vmatpush1.bf16.msra.mxu1 %v4259_v39  ;;  %v4324_v38 = vld [vmem:[#allocation6 + $0x4b4] ss:$20 sps:$4 sm:$0xff]   ;;  %v4327_v39 = vld [vmem:[#allocation6 + $0x4bc] ss:$20 sps:$4 sm:$0xff]  }
 0x17c   :  { %2538 = vmatprep.subr.bf16.mxu0 %v4264_v40  ;;  %2702 = vmatprep.subr.bf16.mxu1 %v4267_v41  ;;  %v193_v40 = vrot.slane %v4868_v3, %v192_v33  ;;  %v569_v41 = vadd.f32 %v4889_v27, %v181_v34  ;;  %v4384_v33 = vld [vmem:[#allocation6 + $0x644] ss:$20 sps:$4 sm:$0xff]   ;;  %v4387_v34 = vld [vmem:[#allocation6 + $0x64c] ss:$20 sps:$4 sm:$0xff]  }
 0x17f   :  { %2539 = vmatpush1.bf16.msra.mxu0 %v4262_v42  ;;  %2703 = vmatpush1.bf16.msra.mxu1 %v4265_v44  ;;  %v4322_v42 = vld [vmem:[#allocation6 + $0x4b0] ss:$20 sps:$4 sm:$0xff]   ;;  %v4325_v44 = vld [vmem:[#allocation6 + $0x4b8] ss:$20 sps:$4 sm:$0xff]  }
 0x180   :  { %2540 = vmatprep.subr.bf16.mxu0 %v4270_v45  ;;  %2704 = vmatprep.subr.bf16.mxu1 %v4273_v46  ;;  %v4330_v45 = vld [vmem:[#allocation6 + $0x4dc] ss:$20 sps:$4 sm:$0xff]   ;;  %v4333_v46 = vld [vmem:[#allocation6 + $0x4e4] ss:$20 sps:$4 sm:$0xff]  }
 0x183   :  { %2541 = vmatpush1.bf16.msra.mxu0 %v4268_v47  ;;  %2705 = vmatpush1.bf16.msra.mxu1 %v4271_v48  ;;  %v658_v48 = vmax.f32 %v569_v41, 0.0  ;;  %v4391_v41 = vld [vmem:[#allocation6 + $0x670] ss:$20 sps:$4 sm:$0xff]  }
 0x184   :  { %2542 = vmatprep.subr.bf16.mxu0 %v4276_v49  ;;  %2706 = vmatprep.subr.bf16.mxu1 %v4279_v50  ;;  %v4328_v49 = vld [vmem:[#allocation6 + $0x4d8] ss:$20 sps:$4 sm:$0xff]   ;;  %v4331_v50 = vld [vmem:[#allocation6 + $0x4e0] ss:$20 sps:$4 sm:$0xff]  }
 0x185   :  { %v4895_v55 = vpop.f32.mrb[4].mxu0 }
 0x186   :  { %v4897_v56 = vpop.f32.mrb[5].mxu0 }
 0x187   :  { %2543 = vmatpush1.bf16.msra.mxu0 %v4274_v51  ;;  %2707 = vmatpush1.bf16.msra.mxu1 %v4277_v52  ;;  %v613_v59 = vpop.f32.mrb[6].mxu0  ;;  %v612_v47 = vadd.f32 %v4897_v56, %v193_v40  ;;  %v4336_v51 = vld [vmem:[#allocation6 + $0x504] ss:$20 sps:$4 sm:$0xff]   ;;  %v4339_v52 = vld [vmem:[#allocation6 + $0x50c] ss:$20 sps:$4 sm:$0xff]  }
 0x188   :  { %2544 = vmatprep.subr.bf16.mxu0 %v4282_v53  ;;  %2708 = vmatprep.subr.bf16.mxu1 %v4285_v54  ;;  %v614_v62 = vpop.f32.mrb[7].mxu0  ;;  %v4899_v12 = vpop.f32.mrb[4].mxu1  ;;  %v4909_v53 = vpack.c.bf16 %v658_v48, %v658_v48  ;;  %v4334_v54 = vld [vmem:[#allocation6 + $0x500] ss:$20 sps:$4 sm:$0xff]   ;;  %v4388_v40 = vld [vmem:[#allocation6 + $0x668] ss:$20 sps:$4 sm:$0xff]  }
 0x189   :  { %v3977_v13 = vpop.f32.mrb[5].mxu1  ;;  %v661_v27 = vmax.f32 %v612_v47, 0.0  ;;  %v4345_v56 = vld [vmem:[#allocation6 + $0x534] ss:$20 sps:$4 sm:$0xff]   ;;  %v4402_v47 = vld [vmem:[#allocation6 + $0x6bc] ss:$20 sps:$4 sm:$0xff]  }
 0x18a   :  { %v653_v14 = vpop.f32.mrb[6].mxu1  ;;  %v4348_v62 = vld [vmem:[#allocation6 + $0x554] ss:$20 sps:$4 sm:$0xff]   ;;  %v4363_v13 = vld [vmem:[#allocation6 + $0x5ac] ss:$20 sps:$4 sm:$0xff]  }
 0x18b   :  { %2545 = vmatpush1.bf16.msra.mxu0 %v4280_v57  ;;  %2709 = vmatpush1.bf16.msra.mxu1 %v4283_v58  ;;  %v3978_v20 = vpop.f32.mrb[7].mxu1  ;;  %v4337_v57 = vld [vmem:[#allocation6 + $0x508] ss:$20 sps:$4 sm:$0xff]   ;;  %v4342_v58 = vld [vmem:[#allocation6 + $0x52c] ss:$20 sps:$4 sm:$0xff]   ;;  %v4911_v59 = vpack.c.bf16 %v661_v27, %v661_v27  ;;  %v188_v27 = vsub.s32 4, %v4865_v1 }
 0x18c   :  { %2546 = vmatprep.subr.bf16.mxu0 %v4288_v60  ;;  %2710 = vmatprep.subr.bf16.mxu1 %v4291_v61  ;;  %v4340_v60 = vld [vmem:[#allocation6 + $0x528] ss:$20 sps:$4 sm:$0xff]   ;;  %v4343_v61 = vld [vmem:[#allocation6 + $0x530] ss:$20 sps:$4 sm:$0xff]   ;;  %v4358_v14 = vld [vmem:[#allocation6 + $0x5a0] ss:$20 sps:$4 sm:$0xff]  }
 0x18d   :  { %v4369_v20 = vld [vmem:[#allocation6 + $0x5d4] ss:$20 sps:$4 sm:$0xff]   ;;  %v4405_v48 = vld [vmem:[#allocation6 + $0x6c4] ss:$20 sps:$4 sm:$0xff]  }
 0x18f   :  { %2547 = vmatpush1.bf16.msra.mxu0 %v4286_v63  ;;  %2711 = vmatpush1.bf16.msra.mxu1 %v4289_v5  ;;  %v4351_v63 = vld [vmem:[#allocation6 + $0x55c] ss:$20 sps:$4 sm:$0xff]  }
 0x190   :  { %2548 = vmatprep.subr.bf16.mxu0 %v4294_v6  ;;  %2712 = vmatprep.subr.bf16.mxu1 %v4297_v7  ;;  %v4346_v5 = vld [vmem:[#allocation6 + $0x550] ss:$20 sps:$4 sm:$0xff]   ;;  %v4349_v6 = vld [vmem:[#allocation6 + $0x558] ss:$20 sps:$4 sm:$0xff]  }
 0x191   :  { %v4354_v7 = vld [vmem:[#allocation6 + $0x57c] ss:$20 sps:$4 sm:$0xff]  }
 0x193   :  { %2549 = vmatpush1.bf16.msra.mxu0 %v4292_v8  ;;  %2713 = vmatpush1.bf16.msra.mxu1 %v4295_v9  ;;  %v4357_v8 = vld [vmem:[#allocation6 + $0x584] ss:$20 sps:$4 sm:$0xff]  }
 0x194   :  { %2550 = vmatprep.subr.bf16.mxu0 %v4300_v10  ;;  %2714 = vmatprep.subr.bf16.mxu1 %v4303_v11  ;;  %v4352_v9 = vld [vmem:[#allocation6 + $0x578] ss:$20 sps:$4 sm:$0xff]   ;;  %v4355_v10 = vld [vmem:[#allocation6 + $0x580] ss:$20 sps:$4 sm:$0xff]  }
 0x195   :  { %v4360_v11 = vld [vmem:[#allocation6 + $0x5a4] ss:$20 sps:$4 sm:$0xff]  }
 0x197   :  { %2551 = vmatpush1.bf16.msra.mxu0 %v4298_v17  ;;  %2715 = vmatpush1.bf16.msra.mxu1 %v4301_v18  ;;  %v4361_v17 = vld [vmem:[#allocation6 + $0x5a8] ss:$20 sps:$4 sm:$0xff]   ;;  %v4366_v18 = vld [vmem:[#allocation6 + $0x5cc] ss:$20 sps:$4 sm:$0xff]  }
 0x198   :  { %2552 = vmatprep.subr.bf16.mxu0 %v4306_v21  ;;  %2716 = vmatprep.subr.bf16.mxu1 %v4309_v22  ;;  %v4364_v21 = vld [vmem:[#allocation6 + $0x5c8] ss:$20 sps:$4 sm:$0xff]   ;;  %v4367_v22 = vld [vmem:[#allocation6 + $0x5d0] ss:$20 sps:$4 sm:$0xff]  }
 0x19b   :  { %2553 = vmatpush1.bf16.msra.mxu0 %v4304_v23  ;;  %2717 = vmatpush1.bf16.msra.mxu1 %v4307_v24  ;;  %v4372_v23 = vld [vmem:[#allocation6 + $0x5f4] ss:$20 sps:$4 sm:$0xff]   ;;  %v4375_v24 = vld [vmem:[#allocation6 + $0x5fc] ss:$20 sps:$4 sm:$0xff]  }
 0x19c   :  { %2554 = vmatprep.subr.bf16.mxu0 %v4312_v25  ;;  %2718 = vmatprep.subr.bf16.mxu1 %v4315_v26  ;;  %v4370_v25 = vld [vmem:[#allocation6 + $0x5f0] ss:$20 sps:$4 sm:$0xff]   ;;  %v4373_v26 = vld [vmem:[#allocation6 + $0x5f8] ss:$20 sps:$4 sm:$0xff]  }
 0x19f   :  { %2555 = vmatpush1.bf16.msra.mxu0 %v4310_v29  ;;  %2719 = vmatpush1.bf16.msra.mxu1 %v4313_v30  ;;  %v4378_v29 = vld [vmem:[#allocation6 + $0x61c] ss:$20 sps:$4 sm:$0xff]   ;;  %v4381_v30 = vld [vmem:[#allocation6 + $0x624] ss:$20 sps:$4 sm:$0xff]  }
 0x1a0   :  { %2556 = vmatprep.subr.bf16.mxu0 %v4318_v31  ;;  %2720 = vmatprep.subr.bf16.mxu1 %v4321_v32  ;;  %v4376_v31 = vld [vmem:[#allocation6 + $0x618] ss:$20 sps:$4 sm:$0xff]   ;;  %v4379_v32 = vld [vmem:[#allocation6 + $0x620] ss:$20 sps:$4 sm:$0xff]  }
 0x1a3   :  { %2557 = vmatpush1.bf16.msra.mxu0 %v4316_v35  ;;  %2721 = vmatpush1.bf16.msra.mxu1 %v4319_v36  ;;  %v4382_v35 = vld [vmem:[#allocation6 + $0x640] ss:$20 sps:$4 sm:$0xff]   ;;  %v4385_v36 = vld [vmem:[#allocation6 + $0x648] ss:$20 sps:$4 sm:$0xff]  }
 0x1a4   :  { %2558 = vmatprep.subr.bf16.mxu0 %v4324_v38  ;;  %2722 = vmatprep.subr.bf16.mxu1 %v4327_v39  ;;  %v4390_v38 = vld [vmem:[#allocation6 + $0x66c] ss:$20 sps:$4 sm:$0xff]   ;;  %v4393_v39 = vld [vmem:[#allocation6 + $0x674] ss:$20 sps:$4 sm:$0xff]  }
 0x1a7   :  { %2559 = vmatpush1.bf16.msra.mxu0 %v4322_v42  ;;  %2723 = vmatpush1.bf16.msra.mxu1 %v4325_v44  ;;  %v4396_v42 = vld [vmem:[#allocation6 + $0x694] ss:$20 sps:$4 sm:$0xff]   ;;  %v4399_v44 = vld [vmem:[#allocation6 + $0x69c] ss:$20 sps:$4 sm:$0xff]  }
 0x1a8   :  { %2560 = vmatprep.subr.bf16.mxu0 %v4330_v45  ;;  %2724 = vmatprep.subr.bf16.mxu1 %v4333_v46  ;;  %v4394_v45 = vld [vmem:[#allocation6 + $0x690] ss:$20 sps:$4 sm:$0xff]   ;;  %v4397_v46 = vld [vmem:[#allocation6 + $0x698] ss:$20 sps:$4 sm:$0xff]  }
 0x1ab   :  { %2561 = vmatpush1.bf16.msra.mxu0 %v4328_v49  ;;  %2725 = vmatpush1.bf16.msra.mxu1 %v4331_v50  ;;  %v4400_v49 = vld [vmem:[#allocation6 + $0x6b8] ss:$20 sps:$4 sm:$0xff]   ;;  %v4403_v50 = vld [vmem:[#allocation6 + $0x6c0] ss:$20 sps:$4 sm:$0xff]  }
 0x1ac   :  { %2571 = vmatprep.subr.bf16.mxu0 %v4336_v51  ;;  %2735 = vmatprep.subr.bf16.mxu1 %v4339_v52  ;;  %v4408_v51 = vld [vmem:[#allocation6 + $0x6e4] ss:$20 sps:$4 sm:$0xff]   ;;  %v4411_v52 = vld [vmem:[#allocation6 + $0x6ec] ss:$20 sps:$4 sm:$0xff]  }
 0x1ae   :  { %2563 = vmatmul.mubr.bf16.vlgmr.msra.gmra.mrb[8].mxu0 %v4909_v53  ;;  %2727 = vmatmul.mubr.bf16.vlgmr.msra.gmra.mrb[8].mxu1 %v4909_v53 }
 0x1af   :  { %2572 = vmatpush1.bf16.msra.mxu0 %v4334_v54  ;;  %2736 = vmatpush1.bf16.msra.mxu1 %v4337_v57  ;;  %v4406_v54 = vld [vmem:[#allocation6 + $0x6e0] ss:$20 sps:$4 sm:$0xff]   ;;  %v4409_v57 = vld [vmem:[#allocation6 + $0x6e8] ss:$20 sps:$4 sm:$0xff]  }
 0x1b0   :  { %2573 = vmatprep.subr.bf16.mxu0 %v4342_v58  ;;  %2737 = vmatprep.subr.bf16.mxu1 %v4345_v56  ;;  %v4414_v58 = vld [vmem:[#allocation6 + $0x70c] ss:$20 sps:$4 sm:$0xff]   ;;  %v4417_v56 = vld [vmem:[#allocation6 + $0x714] ss:$20 sps:$4 sm:$0xff]  }
 0x1b1   :  { %2603 = vmatprep.mubr.bf16.mxu0 %v4911_v59  ;;  %2767 = vmatprep.mubr.bf16.mxu1 %v4911_v59 }
 0x1b3   :  { %2574 = vmatpush1.bf16.msra.mxu0 %v4340_v60  ;;  %2738 = vmatpush1.bf16.msra.mxu1 %v4343_v61  ;;  %v189_v60 = vrot.slane %v4868_v3, %v188_v27  ;;  %v4412_v61 = vld [vmem:[#allocation6 + $0x708] ss:$20 sps:$4 sm:$0xff]  }
 0x1b4   :  { %2575 = vmatprep.subr.bf16.mxu0 %v4348_v62  ;;  %2739 = vmatprep.subr.bf16.mxu1 %v4351_v63  ;;  %v4415_v62 = vld [vmem:[#allocation6 + $0x710] ss:$20 sps:$4 sm:$0xff]   ;;  %v4420_v63 = vld [vmem:[#allocation6 + $0x734] ss:$20 sps:$4 sm:$0xff]  }
 0x1b7   :  { %2576 = vmatpush1.bf16.msra.mxu0 %v4346_v5  ;;  %2740 = vmatpush1.bf16.msra.mxu1 %v4349_v6  ;;  %v4423_v5 = vld [vmem:[#allocation6 + $0x73c] ss:$20 sps:$4 sm:$0xff]   ;;  %v610_v6 = vadd.f32 %v4895_v55, %v189_v60  ;;  %v4430_v55 = vld [vmem:[#allocation6 + $0x780] ss:$20 sps:$4 sm:$0xff]  }
 0x1b8   :  { %2577 = vmatprep.subr.bf16.mxu0 %v4354_v7  ;;  %2741 = vmatprep.subr.bf16.mxu1 %v4357_v8  ;;  %v4418_v7 = vld [vmem:[#allocation6 + $0x730] ss:$20 sps:$4 sm:$0xff]   ;;  %v4421_v8 = vld [vmem:[#allocation6 + $0x738] ss:$20 sps:$4 sm:$0xff]  }
 0x1b9   :  { %v4479_v60 = vld [vmem:[#allocation6 + $0x3d0] ss:$20 sps:$4 sm:$0xff]  }
 0x1bb   :  { %2578 = vmatpush1.bf16.msra.mxu0 %v4352_v9  ;;  %2742 = vmatpush1.bf16.msra.mxu1 %v4355_v10  ;;  %v4426_v9 = vld [vmem:[#allocation6 + $0x75c] ss:$20 sps:$4 sm:$0xff]   ;;  %v4429_v10 = vld [vmem:[#allocation6 + $0x764] ss:$20 sps:$4 sm:$0xff]  }
 0x1bc   :  { %2579 = vmatprep.subr.bf16.mxu0 %v4360_v11  ;;  %2743 = vmatprep.subr.bf16.mxu1 %v4363_v13  ;;  %v660_v11 = vmax.f32 %v610_v6, 0.0  ;;  %v4424_v13 = vld [vmem:[#allocation6 + $0x758] ss:$20 sps:$4 sm:$0xff]  }
 0x1bd   :  { %v4484_v6 = vld [vmem:[#allocation6 + $0x38] ss:$20 sps:$4 sm:$0xff]  }
 0x1bf   :  { %2580 = vmatpush1.bf16.msra.mxu0 %v4358_v14  ;;  %2744 = vmatpush1.bf16.msra.mxu1 %v4361_v17  ;;  %v4427_v14 = vld [vmem:[#allocation6 + $0x760] ss:$20 sps:$4 sm:$0xff]   ;;  %v4432_v17 = vld [vmem:[#allocation6 + $0x784] ss:$20 sps:$4 sm:$0xff]  }
 0x1c0   :  { %2581 = vmatprep.subr.bf16.mxu0 %v4366_v18  ;;  %2745 = vmatprep.subr.bf16.mxu1 %v4369_v20  ;;  %v4435_v18 = vld [vmem:[#allocation6 + $0x78c] ss:$20 sps:$4 sm:$0xff]   ;;  %v4922_v20 = vpack.c.bf16 %v660_v11, %v660_v11 }
 0x1c1   :  { %v4489_v11 = vld [vmem:[#allocation6 + $0x2e0] ss:$20 sps:$4 sm:$0xff]  }
 0x1c3   :  { %2582 = vmatpush1.bf16.msra.mxu0 %v4364_v21  ;;  %2746 = vmatpush1.bf16.msra.mxu1 %v4367_v22  ;;  %v4433_v21 = vld [vmem:[#allocation6 + $0x788] ss:$20 sps:$4 sm:$0xff]   ;;  %v4438_v22 = vld [vmem:[#allocation6 + $0x7ac] ss:$20 sps:$4 sm:$0xff]  }
 0x1c4   :  { %2583 = vmatprep.subr.bf16.mxu0 %v4372_v23  ;;  %2747 = vmatprep.subr.bf16.mxu1 %v4375_v24  ;;  %v4441_v23 = vld [vmem:[#allocation6 + $0x7b4] ss:$20 sps:$4 sm:$0xff]  }
 0x1c5   :  { %v4436_v24 = vld [vmem:[#allocation6 + $0x7a8] ss:$20 sps:$4 sm:$0xff]  }
 0x1c7   :  { %2584 = vmatpush1.bf16.msra.mxu0 %v4370_v25  ;;  %2748 = vmatpush1.bf16.msra.mxu1 %v4373_v26  ;;  %v4439_v25 = vld [vmem:[#allocation6 + $0x7b0] ss:$20 sps:$4 sm:$0xff]   ;;  %v4444_v26 = vld [vmem:[#allocation6 + $0x7d4] ss:$20 sps:$4 sm:$0xff]  }
 0x1c8   :  { %2585 = vmatprep.subr.bf16.mxu0 %v4378_v29  ;;  %2749 = vmatprep.subr.bf16.mxu1 %v4381_v30  ;;  %v4447_v29 = vld [vmem:[#allocation6 + $0x7dc] ss:$20 sps:$4 sm:$0xff]  }
 0x1c9   :  { %v4442_v30 = vld [vmem:[#allocation6 + $0x7d0] ss:$20 sps:$4 sm:$0xff]  }
 0x1cb   :  { %2586 = vmatpush1.bf16.msra.mxu0 %v4376_v31  ;;  %2750 = vmatpush1.bf16.msra.mxu1 %v4379_v32  ;;  %v4445_v31 = vld [vmem:[#allocation6 + $0x7d8] ss:$20 sps:$4 sm:$0xff]   ;;  %v4450_v32 = vld [vmem:[#allocation6 + $0x7fc] ss:$20 sps:$4 sm:$0xff]  }
 0x1cc   :  { %2587 = vmatprep.subr.bf16.mxu0 %v4384_v33  ;;  %2751 = vmatprep.subr.bf16.mxu1 %v4387_v34  ;;  %v4453_v33 = vld [vmem:[#allocation6 + $0x804] ss:$20 sps:$4 sm:$0xff]  }
 0x1cd   :  { %v4448_v34 = vld [vmem:[#allocation6 + $0x7f8] ss:$20 sps:$4 sm:$0xff]  }
 0x1cf   :  { %2588 = vmatpush1.bf16.msra.mxu0 %v4382_v35  ;;  %2752 = vmatpush1.bf16.msra.mxu1 %v4385_v36  ;;  %v4451_v35 = vld [vmem:[#allocation6 + $0x800] ss:$20 sps:$4 sm:$0xff]   ;;  %v4456_v36 = vld [vmem:[#allocation6 + $0x824] ss:$20 sps:$4 sm:$0xff]  }
 0x1d0   :  { %2589 = vmatprep.subr.bf16.mxu0 %v4390_v38  ;;  %2753 = vmatprep.subr.bf16.mxu1 %v4393_v39  ;;  %v4459_v38 = vld [vmem:[#allocation6 + $0x82c] ss:$20 sps:$4 sm:$0xff]   ;;  %v196_v39 = vsub.s32 6, %v4865_v1 }
 0x1d3   :  { %2590 = vmatpush1.bf16.msra.mxu0 %v4388_v40  ;;  %2754 = vmatpush1.bf16.msra.mxu1 %v4391_v41  ;;  %v4457_v40 = vld [vmem:[#allocation6 + $0x828] ss:$20 sps:$4 sm:$0xff]   ;;  %v4462_v41 = vld [vmem:[#allocation6 + $0x84c] ss:$20 sps:$4 sm:$0xff]  }
 0x1d4   :  { %2591 = vmatprep.subr.bf16.mxu0 %v4396_v42  ;;  %2755 = vmatprep.subr.bf16.mxu1 %v4399_v44  ;;  %v4465_v42 = vld [vmem:[#allocation6 + $0x854] ss:$20 sps:$4 sm:$0xff]   ;;  %v197_v44 = vrot.slane %v4868_v3, %v196_v39  ;;  %v4472_v3 = vld [vmem:[#allocation6 + $0x898] ss:$20 sps:$4 sm:$0xff]   ;;  %v4512_v39 = vld [vmem:[#allocation6 + $0x790] ss:$20 sps:$4 sm:$0xff]  }
 0x1d7   :  { %2592 = vmatpush1.bf16.msra.mxu0 %v4394_v45  ;;  %2756 = vmatpush1.bf16.msra.mxu1 %v4397_v46  ;;  %v4460_v45 = vld [vmem:[#allocation6 + $0x848] ss:$20 sps:$4 sm:$0xff]   ;;  %v4463_v46 = vld [vmem:[#allocation6 + $0x850] ss:$20 sps:$4 sm:$0xff]  }
 0x1d8   :  { %2593 = vmatprep.subr.bf16.mxu0 %v4402_v47  ;;  %2757 = vmatprep.subr.bf16.mxu1 %v4405_v48  ;;  %v4468_v47 = vld [vmem:[#allocation6 + $0x874] ss:$20 sps:$4 sm:$0xff]   ;;  %v4471_v48 = vld [vmem:[#allocation6 + $0x87c] ss:$20 sps:$4 sm:$0xff]  }
 0x1db   :  { %2594 = vmatpush1.bf16.msra.mxu0 %v4400_v49  ;;  %2758 = vmatpush1.bf16.msra.mxu1 %v4403_v50  ;;  %v651_v49 = vadd.f32 %v4899_v12, %v197_v44  ;;  %v4466_v50 = vld [vmem:[#allocation6 + $0x870] ss:$20 sps:$4 sm:$0xff]   ;;  %v4517_v44 = vld [vmem:[#allocation6 + $0x560] ss:$20 sps:$4 sm:$0xff]  }
 0x1dc   :  { %2595 = vmatprep.subr.bf16.mxu0 %v4408_v51  ;;  %2759 = vmatprep.subr.bf16.mxu1 %v4411_v52  ;;  %v4469_v51 = vld [vmem:[#allocation6 + $0x878] ss:$20 sps:$4 sm:$0xff]   ;;  %v4474_v52 = vld [vmem:[#allocation6 + $0x89c] ss:$20 sps:$4 sm:$0xff]  }
 0x1dd   :  { %v4480_v12 = vld [vmem:[#allocation6 + $0x10] ss:$20 sps:$4 sm:$0xff]  }
 0x1df   :  { %2596 = vmatpush1.bf16.msra.mxu0 %v4406_v54  ;;  %2760 = vmatpush1.bf16.msra.mxu1 %v4409_v57  ;;  %v4477_v54 = vld [vmem:[#allocation6 + $0x8a4] ss:$20 sps:$4 sm:$0xff]   ;;  %v662_v57 = vmax.f32 %v651_v49, 0.0 }
 0x1e0   :  { %2597 = vmatprep.subr.bf16.mxu0 %v4414_v58  ;;  %2761 = vmatprep.subr.bf16.mxu1 %v4417_v56  ;;  %v4475_v58 = vld [vmem:[#allocation6 + $0x8a0] ss:$20 sps:$4 sm:$0xff]   ;;  %v4478_v56 = vld [vmem:[#allocation6 + $0x150] ss:$20 sps:$4 sm:$0xff]   ;;  %v4525_v49 = vld [vmem:[#allocation6 + $0x718] ss:$20 sps:$4 sm:$0xff]  }
 0x1e3   :  { %2598 = vmatpush1.bf16.msra.mxu0 %v4412_v61  ;;  %2762 = vmatpush1.bf16.msra.mxu1 %v4415_v62  ;;  %v4931_v61 = vpack.c.bf16 %v662_v57, %v662_v57  ;;  %v4481_v62 = vld [vmem:[#allocation6 + $0x290] ss:$20 sps:$4 sm:$0xff]   ;;  %v4530_v57 = vld [vmem:[#allocation6 + $0x880] ss:$20 sps:$4 sm:$0xff]  }
 0x1e4   :  { %2599 = vmatprep.subr.bf16.mxu0 %v4420_v63  ;;  %2763 = vmatprep.subr.bf16.mxu1 %v4423_v5  ;;  %v4482_v63 = vld [vmem:[#allocation6 + $0x178] ss:$20 sps:$4 sm:$0xff]  }
 0x1e5   :  { %v4483_v5 = vld [vmem:[#allocation6 + $0x3f8] ss:$20 sps:$4 sm:$0xff]  }
 0x1e7   :  { %2600 = vmatpush1.bf16.msra.mxu0 %v4418_v7  ;;  %2764 = vmatpush1.bf16.msra.mxu1 %v4421_v8  ;;  %v4485_v7 = vld [vmem:[#allocation6 + $0x2b8] ss:$20 sps:$4 sm:$0xff]   ;;  %v4486_v8 = vld [vmem:[#allocation6 + $0x1a0] ss:$20 sps:$4 sm:$0xff]  }
 0x1e8   :  { %2601 = vmatprep.subr.bf16.mxu0 %v4426_v9  ;;  %2765 = vmatprep.subr.bf16.mxu1 %v4429_v10  ;;  %v4487_v9 = vld [vmem:[#allocation6 + $0x420] ss:$20 sps:$4 sm:$0xff]  }
 0x1e9   :  { %v4488_v10 = vld [vmem:[#allocation6 + $0x60] ss:$20 sps:$4 sm:$0xff]  }
 0x1eb   :  { %2602 = vmatpush1.bf16.msra.mxu0 %v4424_v13  ;;  %2766 = vmatpush1.bf16.msra.mxu1 %v4427_v14  ;;  %v4490_v13 = vld [vmem:[#allocation6 + $0x1c8] ss:$20 sps:$4 sm:$0xff]  }
 0x1ec   :  { %2612 = vmatprep.subr.bf16.mxu0 %v4432_v17  ;;  %2776 = vmatprep.subr.bf16.mxu1 %v4435_v18  ;;  %v4491_v14 = vld [vmem:[#allocation6 + $0x448] ss:$20 sps:$4 sm:$0xff]   ;;  %v4494_v18 = vld [vmem:[#allocation6 + $0x1f0] ss:$20 sps:$4 sm:$0xff]  }
 0x1ed   :  { %v4492_v17 = vld [vmem:[#allocation6 + $0x88] ss:$20 sps:$4 sm:$0xff]  }
 0x1ee   :  { %2604 = vmatmul.mubr.bf16.vlgmr.msra.gmra.mrb[8].mxu0 %v4922_v20  ;;  %2768 = vmatmul.mubr.bf16.vlgmr.msra.gmra.mrb[8].mxu1 %v4922_v20 }
 0x1ef   :  { %2613 = vmatpush1.bf16.msra.mxu0 %v4430_v55  ;;  %2777 = vmatpush1.bf16.msra.mxu1 %v4433_v21  ;;  %v4496_v55 = vld [vmem:[#allocation6 + $0xb0] ss:$20 sps:$4 sm:$0xff]  }
 0x1f0   :  { %2614 = vmatprep.subr.bf16.mxu0 %v4438_v22  ;;  %2778 = vmatprep.subr.bf16.mxu1 %v4441_v23  ;;  %v4497_v21 = vld [vmem:[#allocation6 + $0x330] ss:$20 sps:$4 sm:$0xff]   ;;  %v4498_v22 = vld [vmem:[#allocation6 + $0x218] ss:$20 sps:$4 sm:$0xff]  }
 0x1f1   :  { %2644 = vmatprep.mubr.bf16.mxu0 %v4728_v0  ;;  %2808 = vmatprep.mubr.bf16.mxu1 %v4728_v0  ;;  %v4454_v0 = vld [vmem:[#allocation6 + $0x820] ss:$20 sps:$4 sm:$0xff]   ;;  %v4499_v23 = vld [vmem:[#allocation6 + $0x498] ss:$20 sps:$4 sm:$0xff]  }
 0x1f3   :  { %2615 = vmatpush1.bf16.msra.mxu0 %v4436_v24  ;;  %2779 = vmatpush1.bf16.msra.mxu1 %v4439_v25  ;;  %v4500_v24 = vld [vmem:[#allocation6 + $0xd8] ss:$20 sps:$4 sm:$0xff]  }
 0x1f4   :  { %2616 = vmatprep.subr.bf16.mxu0 %v4444_v26  ;;  %2780 = vmatprep.subr.bf16.mxu1 %v4447_v29  ;;  %v4501_v25 = vld [vmem:[#allocation6 + $0x358] ss:$20 sps:$4 sm:$0xff]   ;;  %v4502_v26 = vld [vmem:[#allocation6 + $0x240] ss:$20 sps:$4 sm:$0xff]  }
 0x1f5   :  { %v4503_v29 = vld [vmem:[#allocation6 + $0x4c0] ss:$20 sps:$4 sm:$0xff]  }
 0x1f7   :  { %2617 = vmatpush1.bf16.msra.mxu0 %v4442_v30  ;;  %2781 = vmatpush1.bf16.msra.mxu1 %v4445_v31  ;;  %v4504_v30 = vld [vmem:[#allocation6 + $0x100] ss:$20 sps:$4 sm:$0xff]  }
 0x1f8   :  { %2618 = vmatprep.subr.bf16.mxu0 %v4450_v32  ;;  %2782 = vmatprep.subr.bf16.mxu1 %v4453_v33  ;;  %v4505_v31 = vld [vmem:[#allocation6 + $0x380] ss:$20 sps:$4 sm:$0xff]   ;;  %v4506_v32 = vld [vmem:[#allocation6 + $0x268] ss:$20 sps:$4 sm:$0xff]  }
 0x1f9   :  { %v4507_v33 = vld [vmem:[#allocation6 + $0x4e8] ss:$20 sps:$4 sm:$0xff]  }
 0x1fb   :  { %2619 = vmatpush1.bf16.msra.mxu0 %v4448_v34  ;;  %2783 = vmatpush1.bf16.msra.mxu1 %v4451_v35  ;;  %v4508_v34 = vld [vmem:[#allocation6 + $0x128] ss:$20 sps:$4 sm:$0xff]  }
 0x1fc   :  { %2620 = vmatprep.subr.bf16.mxu0 %v4456_v36  ;;  %2784 = vmatprep.subr.bf16.mxu1 %v4459_v38  ;;  %v4509_v35 = vld [vmem:[#allocation6 + $0x3a8] ss:$20 sps:$4 sm:$0xff]   ;;  %v4510_v36 = vld [vmem:[#allocation6 + $0x650] ss:$20 sps:$4 sm:$0xff]  }
 0x1fd   :  { %v4511_v38 = vld [vmem:[#allocation6 + $0x510] ss:$20 sps:$4 sm:$0xff]  }
 0x1ff   :  { %2621 = vmatpush1.bf16.msra.mxu0 %v4454_v0  ;;  %2785 = vmatpush1.bf16.msra.mxu1 %v4457_v40  ;;  %v4513_v0 = vld [vmem:[#allocation6 + $0x678] ss:$20 sps:$4 sm:$0xff]  }
 0x200   :  { %2622 = vmatprep.subr.bf16.mxu0 %v4462_v41  ;;  %2786 = vmatprep.subr.bf16.mxu1 %v4465_v42  ;;  %v4514_v40 = vld [vmem:[#allocation6 + $0x538] ss:$20 sps:$4 sm:$0xff]   ;;  %v4516_v42 = vld [vmem:[#allocation6 + $0x6a0] ss:$20 sps:$4 sm:$0xff]  }
 0x201   :  { %v4515_v41 = vld [vmem:[#allocation6 + $0x7b8] ss:$20 sps:$4 sm:$0xff]  }
 0x203   :  { %2623 = vmatpush1.bf16.msra.mxu0 %v4460_v45  ;;  %2787 = vmatpush1.bf16.msra.mxu1 %v4463_v46  ;;  %v4519_v45 = vld [vmem:[#allocation6 + $0x6c8] ss:$20 sps:$4 sm:$0xff]   ;;  %v4522_v46 = vld [vmem:[#allocation6 + $0x6f0] ss:$20 sps:$4 sm:$0xff]  }
 0x204   :  { %2624 = vmatprep.subr.bf16.mxu0 %v4468_v47  ;;  %2788 = vmatprep.subr.bf16.mxu1 %v4471_v48  ;;  %v4523_v47 = vld [vmem:[#allocation6 + $0x5b0] ss:$20 sps:$4 sm:$0xff]  }
 0x205   :  { %v4524_v48 = vld [vmem:[#allocation6 + $0x830] ss:$20 sps:$4 sm:$0xff]  }
 0x207   :  { %2625 = vmatpush1.bf16.msra.mxu0 %v4466_v50  ;;  %2789 = vmatpush1.bf16.msra.mxu1 %v4469_v51  ;;  %v4526_v50 = vld [vmem:[#allocation6 + $0x5d8] ss:$20 sps:$4 sm:$0xff]  }
 0x208   :  { %2626 = vmatprep.subr.bf16.mxu0 %v4474_v52  ;;  %2790 = vmatprep.subr.bf16.mxu1 %v4477_v54  ;;  %v4527_v51 = vld [vmem:[#allocation6 + $0x858] ss:$20 sps:$4 sm:$0xff]   ;;  %v4528_v52 = vld [vmem:[#allocation6 + $0x740] ss:$20 sps:$4 sm:$0xff]  }
 0x209   :  { %v4529_v54 = vld [vmem:[#allocation6 + $0x600] ss:$20 sps:$4 sm:$0xff]  }
 0x20b   :  { %2627 = vmatpush1.bf16.msra.mxu0 %v4472_v3  ;;  %2791 = vmatpush1.bf16.msra.mxu1 %v4475_v58  ;;  %v4531_v3 = vld [vmem:[#allocation6 + $0x768] ss:$20 sps:$4 sm:$0xff]  }
 0x20c   :  { %3831 = vmatprep.subr.bf16.mxu0 %v4478_v56  ;;  %3853 = vmatprep.subr.bf16.mxu1 %v4479_v60  ;;  %v4532_v58 = vld [vmem:[#allocation6 + $0x628] ss:$20 sps:$4 sm:$0xff]  }
 0x20d   :  { %v4533_v56 = vld [vmem:[#allocation6 + $0x8a8] ss:$20 sps:$4 sm:$0xff]  }
 0x20e   :  { %2645 = vmatmul.mubr.bf16.vlgmr.msra.gmra.mrb[8].mxu0 %v4931_v61  ;;  %2809 = vmatmul.mubr.bf16.vlgmr.msra.gmra.mrb[8].mxu1 %v4931_v61  ;;  %v4534_v60 = vld [vmem:[#allocation9 + $0x40] sm:$0xff]  }
 0x20f   :  { %3832 = vmatpush3.bf16.msra.mxu0 %v4480_v12  ;;  %2849 = vmatprep.mubr.bf16.mxu0 %v4878_v16  ;;  %v4493_v16 = vld [vmem:[#allocation6 + $0x308] ss:$20 sps:$4 sm:$0xff]  }
 0x210   :  { %3854 = vmatpush3.bf16.msra.mxu1 %v4481_v62  ;;  %2889 = vmatprep.mubr.bf16.mxu1 %v4891_v37  ;;  %v4495_v37 = vld [vmem:[#allocation6 + $0x470] ss:$20 sps:$4 sm:$0xff]  }
 0x211   :  { %3833 = vmatprep.subr.bf16.mxu0 %v4482_v63  ;;  %3855 = vmatprep.subr.bf16.mxu1 %v4483_v5  ;;  %v4535_v12 = vld [vmem:[#allocation9 + $0xc0] sm:$0xff]   ;;  %v4538_v5 = vld [vmem:[#allocation9 + $0x48] sm:$0xff]  }
 0x212   :  { %v4536_v62 = vld [vmem:[#allocation9] sm:$0xff]  }
 0x213   :  { %3834 = vmatpush3.bf16.msra.mxu0 %v4484_v6  ;;  %v4537_v63 = vld [vmem:[#allocation9 + $0x80] sm:$0xff]   ;;  %v4539_v6 = vld [vmem:[#allocation9 + $0xc8] sm:$0xff]  }
 0x214   :  { %3856 = vmatpush3.bf16.msra.mxu1 %v4485_v7  ;;  %3835 = vmatprep.subr.bf16.mxu0 %v4486_v8  ;;  %v4540_v7 = vld [vmem:[#allocation9 + $0x8] sm:$0xff]  }
 0x215   :  { %3857 = vmatprep.subr.bf16.mxu1 %v4487_v9  ;;  %v4541_v8 = vld [vmem:[#allocation9 + $0x88] sm:$0xff]   ;;  %v4542_v9 = vld [vmem:[#allocation9 + $0x50] sm:$0xff]  }
 0x217   :  { %3836 = vmatpush3.bf16.msra.mxu0 %v4488_v10  ;;  %v4543_v10 = vld [vmem:[#allocation9 + $0xd0] sm:$0xff]  }
 0x218   :  { %3858 = vmatpush3.bf16.msra.mxu1 %v4489_v11  ;;  %3837 = vmatprep.subr.bf16.mxu0 %v4490_v13  ;;  %v4544_v11 = vld [vmem:[#allocation9 + $0x10] sm:$0xff]  }
 0x219   :  { %3859 = vmatprep.subr.bf16.mxu1 %v4491_v14  ;;  %v4545_v13 = vld [vmem:[#allocation9 + $0x90] sm:$0xff]   ;;  %v4546_v14 = vld [vmem:[#allocation9 + $0x58] sm:$0xff]  }
 0x21b   :  { %3838 = vmatpush3.bf16.msra.mxu0 %v4492_v17  ;;  %v4547_v17 = vld [vmem:[#allocation9 + $0xd8] sm:$0xff]  }
 0x21c   :  { %3860 = vmatpush3.bf16.msra.mxu1 %v4493_v16  ;;  %3839 = vmatprep.subr.bf16.mxu0 %v4494_v18  ;;  %v4550_v16 = vld [vmem:[#allocation9 + $0x60] sm:$0xff]  }
 0x21d   :  { %3861 = vmatprep.subr.bf16.mxu1 %v4495_v37  ;;  %v4551_v18 = vld [vmem:[#allocation9 + $0xe0] sm:$0xff]  }
 0x21e   :  { %v4552_v37 = vld [vmem:[#allocation9 + $0x20] sm:$0xff]  }
 0x21f   :  { %3840 = vmatpush3.bf16.msra.mxu0 %v4496_v55  ;;  %v4553_v55 = vld [vmem:[#allocation9 + $0xa0] sm:$0xff]  }
 0x220   :  { %3862 = vmatpush3.bf16.msra.mxu1 %v4497_v21  ;;  %3841 = vmatprep.subr.bf16.mxu0 %v4498_v22  ;;  %v4554_v21 = vld [vmem:[#allocation9 + $0x68] sm:$0xff]  }
 0x221   :  { %3863 = vmatprep.subr.bf16.mxu1 %v4499_v23  ;;  %v4555_v22 = vld [vmem:[#allocation9 + $0xe8] sm:$0xff]  }
 0x222   :  { %v4556_v23 = vld [vmem:[#allocation9 + $0x28] sm:$0xff]  }
 0x223   :  { %3842 = vmatpush3.bf16.msra.mxu0 %v4500_v24  ;;  %v4557_v24 = vld [vmem:[#allocation9 + $0xa8] sm:$0xff]  }
 0x224   :  { %3864 = vmatpush3.bf16.msra.mxu1 %v4501_v25  ;;  %3843 = vmatprep.subr.bf16.mxu0 %v4502_v26  ;;  %v4558_v25 = vld [vmem:[#allocation9 + $0x70] sm:$0xff]  }
 0x225   :  { %3865 = vmatprep.subr.bf16.mxu1 %v4503_v29  ;;  %v4559_v26 = vld [vmem:[#allocation9 + $0xf0] sm:$0xff]  }
 0x226   :  { %v4560_v29 = vld [vmem:[#allocation9 + $0x30] sm:$0xff]  }
 0x227   :  { %3844 = vmatpush3.bf16.msra.mxu0 %v4504_v30  ;;  %v4561_v30 = vld [vmem:[#allocation9 + $0xb0] sm:$0xff]  }
 0x228   :  { %3866 = vmatpush3.bf16.msra.mxu1 %v4505_v31  ;;  %3845 = vmatprep.subr.bf16.mxu0 %v4506_v32  ;;  %v4562_v31 = vld [vmem:[#allocation9 + $0x78] sm:$0xff]  }
 0x229   :  { %3867 = vmatprep.subr.bf16.mxu1 %v4507_v33  ;;  %v4563_v32 = vld [vmem:[#allocation9 + $0xf8] sm:$0xff]  }
 0x22a   :  { %v4564_v33 = vld [vmem:[#allocation9 + $0x38] sm:$0xff]  }
 0x22b   :  { %3846 = vmatpush3.bf16.msra.mxu0 %v4508_v34  ;;  %v4565_v34 = vld [vmem:[#allocation9 + $0xb8] sm:$0xff]  }
 0x22c   :  { %3868 = vmatpush3.bf16.msra.mxu1 %v4509_v35  ;;  %3875 = vmatprep.subr.bf16.mxu0 %v4510_v36  ;;  %v1006_v35 = vld [vmem:[#allocation7] sm:$0x1f] }
 0x22d   :  { %3979 = vmatprep.subr.bf16.mxu1 %v4729_v43  ;;  %v1011_v36 = vrot.slane %v1006_v35, %v172_v2 }
 0x22e   :  { %2850 = vmatmul.mubr.bf16.vlgmr.msra.gmra.mrb[12].mxu0 %v4880_v19  ;;  %v4518_v19 = vld [vmem:[#allocation6 + $0x7e0] ss:$20 sps:$4 sm:$0xff]  }
 0x22f   :  { %2890 = vmatmul.mubr.bf16.vlgmr.msra.gmra.mrb[12].mxu1 %v4909_v53  ;;  %3876 = vmatpush3.bf16.msra.mxu0 %v4511_v38  ;;  %v4520_v53 = vld [vmem:[#allocation6 + $0x588] ss:$20 sps:$4 sm:$0xff]   ;;  %v1019_v38 = vrot.slane %v1006_v35, %v180_v28 }
 0x230   :  { %2929 = vmatprep.mubr.bf16.mxu0 %v4911_v59  ;;  %3980 = vmatpush3.bf16.msra.mxu1 %v4512_v39  ;;  %v4521_v59 = vld [vmem:[#allocation6 + $0x808] ss:$20 sps:$4 sm:$0xff]   ;;  %v1015_v39 = vrot.slane %v1006_v35, %v176_v4 }
 0x231   :  { %3877 = vmatprep.subr.bf16.mxu0 %v4513_v0  ;;  %3981 = vmatprep.subr.bf16.mxu1 %v4729_v43  ;;  %v1023_v0 = vrot.slane %v1006_v35, %v184_v15 }
 0x232   :  { %3995 = vmatprep.mubr.msk.bf16.mxu1 %vm4730_vm0, %v4729_v43 }
 0x233   :  { %3878 = vmatpush3.bf16.msra.mxu0 %v4514_v40 }
 0x234   :  { %3982 = vmatpush3.bf16.msra.mxu1 %v4515_v41  ;;  %3879 = vmatprep.subr.bf16.mxu0 %v4516_v42 }
 0x235   :  { %3983 = vmatprep.subr.bf16.mxu1 %v4729_v43 }
 0x237   :  { %3880 = vmatpush3.bf16.msra.mxu0 %v4517_v44 }
 0x238   :  { %3984 = vmatpush3.bf16.msra.mxu1 %v4518_v19  ;;  %3881 = vmatprep.subr.bf16.mxu0 %v4519_v45 }
 0x239   :  { %3985 = vmatprep.subr.bf16.mxu1 %v4729_v43 }
 0x23b   :  { %3882 = vmatpush3.bf16.msra.mxu0 %v4520_v53 }
 0x23c   :  { %3986 = vmatpush3.bf16.msra.mxu1 %v4521_v59  ;;  %3883 = vmatprep.subr.bf16.mxu0 %v4522_v46 }
 0x23d   :  { %3987 = vmatprep.subr.bf16.mxu1 %v4729_v43 }
 0x23f   :  { %3884 = vmatpush3.bf16.msra.mxu0 %v4523_v47 }
 0x240   :  { %3988 = vmatpush3.bf16.msra.mxu1 %v4524_v48  ;;  %3885 = vmatprep.subr.bf16.mxu0 %v4525_v49 }
 0x241   :  { %3989 = vmatprep.subr.bf16.mxu1 %v4729_v43 }
 0x243   :  { %3886 = vmatpush3.bf16.msra.mxu0 %v4526_v50 }
 0x244   :  { %3990 = vmatpush3.bf16.msra.mxu1 %v4527_v51  ;;  %3887 = vmatprep.subr.bf16.mxu0 %v4528_v52 }
 0x245   :  { %3991 = vmatprep.subr.bf16.mxu1 %v4729_v43 }
 0x247   :  { %3888 = vmatpush3.bf16.msra.mxu0 %v4529_v54  ;;  %v4566_v54 = vld [vmem:[#allocation9 + $0x100] sm:$0xff]  }
 0x248   :  { %3992 = vmatpush3.bf16.msra.mxu1 %v4530_v57  ;;  %3889 = vmatprep.subr.bf16.mxu0 %v4531_v3  ;;  %v4567_v3 = vld [vmem:[#allocation9 + $0x108] sm:$0xff]  }
 0x249   :  { %3993 = vmatprep.subr.bf16.mxu1 %v4729_v43 }
 0x24b   :  { %3890 = vmatpush3.bf16.msra.mxu0 %v4532_v58  ;;  %v4568_v58 = vld [vmem:[#allocation9 + $0x110] sm:$0xff]  }
 0x24c   :  { %3994 = vmatpush3.bf16.msra.mxu1 %v4533_v56  ;;  %3906 = vmatprep.subr.bf16.mxu0 %v4534_v60  ;;  %v4569_v56 = vld [vmem:[#allocation9 + $0x118] sm:$0xff]   ;;  %v4570_v60 = vld [vmem:[#allocation9 + $0x120] sm:$0xff]  }
 0x24d   :  { %3928 = vmatprep.subr.bf16.mxu1 %v4535_v12  ;;  %v4571_v12 = vld [vmem:[#allocation9 + $0x128] sm:$0xff]  }
 0x24e   :  { %2930 = vmatmul.mubr.bf16.vlgmr.msra.gmra.mrb[16].mxu0 %v4922_v20  ;;  %v4548_v20 = vld [vmem:[#allocation9 + $0x18] sm:$0xff]  }
 0x24f   :  { %3996 = vmatmul.mubr.bf16.vlgmr.msra.gmra.mrb[16].mxu1 %v4931_v61  ;;  %3907 = vmatpush3.bf16.msra.mxu0 %v4536_v62  ;;  %v4549_v61 = vld [vmem:[#allocation9 + $0x98] sm:$0xff]   ;;  %v4572_v62 = vld [vmem:[#allocation9 + $0x130] sm:$0xff]  }
 0x250   :  { %3929 = vmatpush3.bf16.msra.mxu1 %v4537_v63  ;;  %3908 = vmatprep.subr.bf16.mxu0 %v4538_v5  ;;  %v1027_v5 = vrot.slane %v1006_v35, %v188_v27 }
 0x251   :  { %3930 = vmatprep.subr.bf16.mxu1 %v4539_v6 }
 0x253   :  { %3909 = vmatpush3.bf16.msra.mxu0 %v4540_v7 }
 0x254   :  { %3931 = vmatpush3.bf16.msra.mxu1 %v4541_v8  ;;  %3910 = vmatprep.subr.bf16.mxu0 %v4542_v9 }
 0x255   :  { %3932 = vmatprep.subr.bf16.mxu1 %v4543_v10 }
 0x257   :  { %3911 = vmatpush3.bf16.msra.mxu0 %v4544_v11  ;;  %v4573_v11 = vld [vmem:[#allocation9 + $0x138] sm:$0xff]  }
 0x258   :  { %3933 = vmatpush3.bf16.msra.mxu1 %v4545_v13  ;;  %3912 = vmatprep.subr.bf16.mxu0 %v4546_v14 }
 0x259   :  { %3934 = vmatprep.subr.bf16.mxu1 %v4547_v17 }
 0x25b   :  { %3913 = vmatpush3.bf16.msra.mxu0 %v4548_v20 }
 0x25c   :  { %3935 = vmatpush3.bf16.msra.mxu1 %v4549_v61  ;;  %3914 = vmatprep.subr.bf16.mxu0 %v4550_v16 }
 0x25d   :  { %3936 = vmatprep.subr.bf16.mxu1 %v4551_v18 }
 0x25f   :  { %3915 = vmatpush3.bf16.msra.mxu0 %v4552_v37 }
 0x260   :  { %3937 = vmatpush3.bf16.msra.mxu1 %v4553_v55  ;;  %3916 = vmatprep.subr.bf16.mxu0 %v4554_v21 }
 0x261   :  { %3938 = vmatprep.subr.bf16.mxu1 %v4555_v22 }
 0x263   :  { %3917 = vmatpush3.bf16.msra.mxu0 %v4556_v23 }
 0x264   :  { %3939 = vmatpush3.bf16.msra.mxu1 %v4557_v24  ;;  %3918 = vmatprep.subr.bf16.mxu0 %v4558_v25 }
 0x265   :  { %3940 = vmatprep.subr.bf16.mxu1 %v4559_v26 }
 0x267   :  { %3919 = vmatpush3.bf16.msra.mxu0 %v4560_v29 }
 0x268   :  { %3941 = vmatpush3.bf16.msra.mxu1 %v4561_v30  ;;  %3920 = vmatprep.subr.bf16.mxu0 %v4562_v31 }
 0x269   :  { %3942 = vmatprep.subr.bf16.mxu1 %v4563_v32  ;;  %v3781_v32 = vld [vmem:[#allocation10] ss:$0 sm:$0xff] }
 0x26b   :  { %3921 = vmatpush3.bf16.msra.mxu0 %v4564_v33 }
 0x26c   :  { %3943 = vmatpush3.bf16.msra.mxu1 %v4565_v34  ;;  %3999 = vmatprep.subr.bf16.mxu0 %v4729_v43 }
 0x2e1   :  { %v2646_v40 = vpop.f32.mrb[8].mxu0  ;;  %v2810_v41 = vpop.f32.mrb[8].mxu1 }
 0x2e2   :  { %v4019_v42 = vadd.f32 %v2646_v40, %v1011_v36  ;;  %v4021_v44 = vadd.f32 %v2810_v41, %v1019_v38  ;;  %v2648_v19 = vpop.f32.mrb[9].mxu0  ;;  %v2812_v45 = vpop.f32.mrb[9].mxu1 }
 0x2e3   :  { %v4020_v53 = vadd.f32 %v2648_v19, %v1015_v39  ;;  %v4022_v59 = vadd.f32 %v2812_v45, %v1023_v0  ;;  %v2650_v46 = vpop.f32.mrb[10].mxu0  ;;  %v2814_v47 = vpop.f32.mrb[10].mxu1 }
 0x2e4   :  { %v2977_v2 = vmax.f32 %v4019_v42, 0.0  ;;  %v2979_v48 = vmax.f32 %v4021_v44, 0.0  ;;  %v2651_v49 = vpop.f32.mrb[11].mxu0  ;;  %v2815_v28 = vpop.f32.mrb[11].mxu1 }
 0x2e5   :  { %v2978_v50 = vmax.f32 %v4020_v53, 0.0  ;;  %v2980_v51 = vmax.f32 %v4022_v59, 0.0 }
 0x2e6   :  { %v2982_v15 = vpack.c.bf16 %v2977_v2, %v2977_v2  ;;  %v2984_v57 = vpack.c.bf16 %v2979_v48, %v2979_v48 }
 0x2e7   :  { %v2983_v4 = vpack.c.bf16 %v2978_v50, %v2978_v50  ;;  %v2985_v52 = vpack.c.bf16 %v2980_v51, %v2980_v51 }
 0x2e9   :  { %3346 = vmatprep.mubr.bf16.mxu0 %v2983_v4  ;;  %3386 = vmatprep.mubr.bf16.mxu1 %v2985_v52 }
 0x2ea   :  { %3347 = vmatmul.mubr.bf16.vlgmr.msra.gmra.mrb[20].mxu0 %v2982_v15  ;;  %3387 = vmatmul.mubr.bf16.vlgmr.msra.gmra.mrb[20].mxu1 %v2984_v57 }
 0x2eb   :  { %4000 = vmatpush3.bf16.msra.mxu0 %v4566_v54  ;;  %4015 = vmatprep.mubr.msk.bf16.mxu0 %vm4730_vm0, %v4729_v43 }
 0x2ec   :  { %4001 = vmatprep.subr.bf16.mxu0 %v4729_v43 }
 0x2ef   :  { %4002 = vmatpush3.bf16.msra.mxu0 %v4567_v3 }
 0x2f0   :  { %4003 = vmatprep.subr.bf16.mxu0 %v4729_v43 }
 0x2f3   :  { %4004 = vmatpush3.bf16.msra.mxu0 %v4568_v58 }
 0x2f4   :  { %4005 = vmatprep.subr.bf16.mxu0 %v4729_v43 }
 0x2f7   :  { %4006 = vmatpush3.bf16.msra.mxu0 %v4569_v56 }
 0x2f8   :  { %4007 = vmatprep.subr.bf16.mxu0 %v4729_v43 }
 0x2fb   :  { %4008 = vmatpush3.bf16.msra.mxu0 %v4570_v60 }
 0x2fc   :  { %4009 = vmatprep.subr.bf16.mxu0 %v4729_v43 }
 0x2ff   :  { %4010 = vmatpush3.bf16.msra.mxu0 %v4571_v12 }
 0x300   :  { %4011 = vmatprep.subr.bf16.mxu0 %v4729_v43 }
 0x301   :  { %v3847_v63 = vpop.f32.mrb[12].mxu0 }
 0x302   :  { %v3869_v6 = vpop.f32.mrb[12].mxu1  ;;  %v3848_v7 = vpop.f32.mrb[13].mxu0 }
 0x303   :  { %v3849_v8 = vadd.f32 %v3848_v7, %v3847_v63  ;;  %v3870_v9 = vpop.f32.mrb[13].mxu1  ;;  %v3850_v10 = vpop.f32.mrb[14].mxu0  ;;  %4012 = vmatpush3.bf16.msra.mxu0 %v4572_v62 }
 0x304   :  { %v3871_v13 = vadd.f32 %v3870_v9, %v3869_v6  ;;  %v3872_v14 = vpop.f32.mrb[14].mxu1  ;;  %v3851_v17 = vpop.f32.mrb[15].mxu0  ;;  %4013 = vmatprep.subr.bf16.mxu0 %v4729_v43 }
 0x305   :  { %v2852_v20 = vadd.f32 %v3849_v8, %v1027_v5  ;;  %v3873_v61 = vpop.f32.mrb[15].mxu1 }
 0x307   :  { %v2892_v16 = vadd.f32 %v3871_v13, %v2852_v20  ;;  %4014 = vmatpush3.bf16.msra.mxu0 %v4573_v11 }
 0x321   :  { %v3891_v18 = vpop.f32.mrb[16].mxu0 }
 0x322   :  { %v2971_v37 = vpop.f32.mrb[16].mxu1  ;;  %v3892_v1 = vpop.f32.mrb[17].mxu0 }
 0x323   :  { %v3893_v27 = vadd.f32 %v3892_v1, %v3891_v18  ;;  %v3997_v55 = vpop.f32.mrb[17].mxu1  ;;  %v3894_v21 = vpop.f32.mrb[18].mxu0 }
 0x324   :  { %v2974_v22 = vpop.f32.mrb[18].mxu1  ;;  %v3895_v23 = vpop.f32.mrb[19].mxu0 }
 0x325   :  { %v2932_v24 = vadd.f32 %v3893_v27, %v2892_v16  ;;  %v3998_v25 = vpop.f32.mrb[19].mxu1 }
 0x327   :  { %v2972_v26 = vadd.f32 %v2971_v37, %v2932_v24 }
 0x329   :  { %v2981_v29 = vmax.f32 %v2972_v26, 0.0 }
 0x32b   :  { %v2986_v30 = vpack.c.bf16 %v2981_v29, %v2981_v29 }
 0x32d   :  { %4016 = vmatmul.mubr.bf16.vlgmr.msra.gmra.mrb[24].mxu0 %v2986_v30 }
 0x3bd   :  { %v3922_v31 = vpop.f32.mrb[20].mxu0  ;;  %v3944_v43 = vpop.f32.mrb[20].mxu1 }
 0x3be   :  { %v3923_v33 = vpop.f32.mrb[21].mxu0  ;;  %v3945_v34 = vpop.f32.mrb[21].mxu1 }
 0x3bf   :  { %v3924_v35 = vadd.f32 %v3923_v33, %v3922_v31  ;;  %v3946_v36 = vadd.f32 %v3945_v34, %v3944_v43  ;;  %v3925_v38 = vpop.f32.mrb[22].mxu0  ;;  %v3947_v39 = vpop.f32.mrb[22].mxu1 }
 0x3c0   :  { %v3926_v0 = vpop.f32.mrb[23].mxu0  ;;  %v3948_v40 = vpop.f32.mrb[23].mxu1 }
 0x3c1   :  { %v3349_v41 = vadd.f32 %v3924_v35, %v3781_v32 }
 0x3c3   :  { %v3389_v42 = vadd.f32 %v3946_v36, %v3349_v41 }
 0x400   :  { %v3428_v44 = vpop.f32.mrb[24].mxu0 }
 0x401   :  { %v3429_v19 = vadd.f32 %v3428_v44, %v3389_v42  ;;  %v4017_v45 = vpop.f32.mrb[25].mxu0 }
 0x402   :  { %v3431_v53 = vpop.f32.mrb[26].mxu0 }
 0x403   :  { %4574 = vtanh.f32 %v3429_v19  ;;  %v4018_v59 = vpop.f32.mrb[27].mxu0 }
 0x40d   :  { %v4575_v46 = vpop.eup %4574 }
 0x40e   :  { %v3435_v47 = vpack.c.bf16 %v4575_v46, %v4575_v46 }
 0x410   :  { %3436 = vst [vmem:[%s4982_s7] sm:$0xf] %v3435_v47 }
 0x411   :  { %3441 = vsyncpa [#allocation3], 1 }
 0x412   :  { %3442 = vsyncpa [#allocation5], 1 }
 0x413   :  { %3443 = vsyncpa [#allocation8], 1 }
 0x414   :  { %3444 = vsyncpa [#allocation11], 1 }

</bundles_post_ra>
